<compile_context>
chip_gen: v7x
topology: tpu7x:2x2x1
jax: 0.10.0
libtpu: 0.0.40
codegen_flags: <defaults>
</compile_context>

<pallas_src>
import functools
import math

import jax
import jax.numpy as jnp
from jax.experimental import pallas as pl
from jax.experimental.pallas import tpu as pltpu


# ----------------------------------------------------------------------------
# Config
# ----------------------------------------------------------------------------

CFG = dict(vocab=100, max_pos=16, hidden=32, heads=2, ffn=64, layers=2)
TASK_LABELS = {"scotus": 3, "ledgar": 5}

_TASK_OFFSETS = {}
_off = 0
for _t, _n in TASK_LABELS.items():
    _TASK_OFFSETS[_t] = (_off, _n)
    _off += _n
TOTAL_LABELS = _off

LN_EPS = 1e-12


# ----------------------------------------------------------------------------
# In-kernel helpers (all f32 math)
# ----------------------------------------------------------------------------

def _gelu(x):
    # TODO(synk): PyTorch/BERT default GELU is erf-based; tanh approximation used here
    # (EUP-friendly, avoids relying on an erf lowering in Mosaic).
    c = 0.7978845608028654  # sqrt(2/pi)
    return 0.5 * x * (1.0 + jnp.tanh(c * (x + 0.044715 * x * x * x)))


def _layernorm(y, g, b, eps):
    mu = jnp.mean(y, axis=-1, keepdims=True)
    var = jnp.mean((y - mu) * (y - mu), axis=-1, keepdims=True)
    return (y - mu) * jax.lax.rsqrt(var + eps) * g + b


# ----------------------------------------------------------------------------
# The single fused forward kernel
# ----------------------------------------------------------------------------

def fused_forward_kernel(x_ref, bias_ref, eg_ref, eb_ref,
                         wqkv_ref, bqkv_ref, wo_ref, bo_ref,
                         g1_ref, bln1_ref,
                         w1_ref, bf1_ref, w2_ref, bf2_ref,
                         g2_ref, bln2_ref,
                         hw_ref, hb_ref,
                         o_ref,
                         *, n_layers, n_heads, d_head, scale, eps):
    """Whole encoder + heads in one launch.

    x:[M,H] f32 (M = B*S embedded tokens), bias:[M,M] f32 additive
    (block-diagonal per batch + -1e9 on padded keys).
    Per-layer weight stacks have a leading layer axis; all MXU operands bf16.
    Output: [M, TOTAL_LABELS] logits for every token (wrapper takes CLS rows).
    """
    M, H = x_ref.shape

    # Embedding LayerNorm (no residual).
    x = _layernorm(x_ref[...], eg_ref[...], eb_ref[...], eps)          # [M, H] f32
    bias = bias_ref[...]                                               # [M, M] f32

    for l in range(n_layers):
        # ---- Attention block: fused QKV + per-head attention + out proj + residual + LN1
        qkv = jnp.dot(x.astype(jnp.bfloat16), wqkv_ref[l],
                      preferred_element_type=jnp.float32) + bqkv_ref[l]   # [M, 3H]
        wo = wo_ref[l]                                                    # [H, H] bf16

        attn = jnp.zeros((M, H), jnp.float32)
        for h in range(n_heads):
            lo = h * d_head
            # scale folded into q (small operand) instead of the [M, M] scores
            q_h = (qkv[:, lo:lo + d_head] * scale).astype(jnp.bfloat16)          # [M, Dh]
            k_h = qkv[:, H + lo:H + lo + d_head].astype(jnp.bfloat16)            # [M, Dh]
            v_h = qkv[:, 2 * H + lo:2 * H + lo + d_head].astype(jnp.bfloat16)    # [M, Dh]

            # q @ k^T via dot_general contracting on Dh (no explicit transpose).
            s_h = jax.lax.dot_general(q_h, k_h, (((1,), (1,)), ((), ())),
                                      preferred_element_type=jnp.float32)        # [M, M]
            s_h = s_h + bias
            s_h = s_h - jnp.max(s_h, axis=-1, keepdims=True)
            p_h = jnp.exp(s_h)
            p_h = p_h * pl.reciprocal(jnp.sum(p_h, axis=-1, keepdims=True), approx=True)

            ctx_h = jnp.dot(p_h.astype(jnp.bfloat16), v_h,
                            preferred_element_type=jnp.float32)                  # [M, Dh]
            # Accumulate partial output projection (no lane-axis concat of heads).
            attn = attn + jnp.dot(ctx_h.astype(jnp.bfloat16), wo[lo:lo + d_head, :],
                                  preferred_element_type=jnp.float32)            # [M, H]

        attn = attn + bo_ref[l]
        x = _layernorm(attn + x, g1_ref[l], bln1_ref[l], eps)

        # ---- FFN block: W1 + GELU -> W2 + residual + LN2 (intermediate stays in vregs/VMEM)
        h_mid = jnp.dot(x.astype(jnp.bfloat16), w1_ref[l],
                        preferred_element_type=jnp.float32) + bf1_ref[l]          # [M, F]
        h_mid = _gelu(h_mid)
        y = jnp.dot(h_mid.astype(jnp.bfloat16), w2_ref[l],
                    preferred_element_type=jnp.float32) + bf2_ref[l]              # [M, H]
        x = _layernorm(y + x, g2_ref[l], bln2_ref[l], eps)

    # ---- All task heads in one concatenated matmul (epilogue of the fused kernel).
    logits = jnp.dot(x.astype(jnp.bfloat16), hw_ref[...],
                     preferred_element_type=jnp.float32) + hb_ref[...]            # [M, Ntot]
    o_ref[...] = logits.astype(o_ref.dtype)


def fused_forward(x, bias, params):
    """Single pallas_call, no grid: every operand is a whole-array VMEM-resident ref."""
    M, _ = x.shape
    H = CFG["hidden"]
    d_head = H // CFG["heads"]
    kern = functools.partial(
        fused_forward_kernel,
        n_layers=CFG["layers"], n_heads=CFG["heads"], d_head=d_head,
        scale=1.0 / math.sqrt(d_head), eps=LN_EPS)
    return pl.pallas_call(
        kern,
        out_shape=jax.ShapeDtypeStruct((M, TOTAL_LABELS), jnp.float32),
        # No grid / BlockSpecs: single invocation, full arrays in VMEM (< 100 KB total).
        compiler_params=pltpu.CompilerParams(vmem_limit_bytes=32 * 1024 * 1024),
    )(x, bias,
      params["emb_ln_g"], params["emb_ln_b"],
      params["wqkv"], params["bqkv"], params["wo"], params["bo"],
      params["ln1_g"], params["ln1_b"],
      params["w1"], params["b1"], params["w2"], params["b2"],
      params["ln2_g"], params["ln2_b"],
      params["head_w"], params["head_b"])


# ----------------------------------------------------------------------------
# Model: parameter init + forward
# ----------------------------------------------------------------------------

def init_params(key):
    # TODO(synk): the PyTorch module loads pretrained AutoModel weights; here the encoder
    # is a deterministic randomly-initialized BERT-like stack of the same structure.
    H, F, L = CFG["hidden"], CFG["ffn"], CFG["layers"]
    std = 0.02

    def nrm(k, shape, dtype=jnp.float32):
        return (std * jax.random.normal(k, shape, jnp.float32)).astype(dtype)

    ks = iter(jax.random.split(key, 10))
    return {
        "tok_emb": nrm(next(ks), (CFG["vocab"], H)),
        "pos_emb": nrm(next(ks), (CFG["max_pos"], H)),
        "emb_ln_g": jnp.ones((1, H), jnp.float32),
        "emb_ln_b": jnp.zeros((1, H), jnp.float32),
        # Per-layer weight stacks (leading layer axis), bf16 MXU-operand storage.
        "wqkv": nrm(next(ks), (L, H, 3 * H), jnp.bfloat16),
        "bqkv": jnp.zeros((L, 1, 3 * H), jnp.float32),
        "wo": nrm(next(ks), (L, H, H), jnp.bfloat16),
        "bo": jnp.zeros((L, 1, H), jnp.float32),
        "ln1_g": jnp.ones((L, 1, H), jnp.float32),
        "ln1_b": jnp.zeros((L, 1, H), jnp.float32),
        "w1": nrm(next(ks), (L, H, F), jnp.bfloat16),
        "b1": jnp.zeros((L, 1, F), jnp.float32),
        "w2": nrm(next(ks), (L, F, H), jnp.bfloat16),
        "b2": jnp.zeros((L, 1, H), jnp.float32),
        "ln2_g": jnp.ones((L, 1, H), jnp.float32),
        "ln2_b": jnp.zeros((L, 1, H), jnp.float32),
        # All task classifier heads concatenated on the output (lane) axis.
        "head_w": nrm(next(ks), (H, TOTAL_LABELS), jnp.bfloat16),
        "head_b": jnp.zeros((1, TOTAL_LABELS), jnp.float32),
    }


@functools.partial(jax.jit, static_argnames=("task_name",))
def forward(params, input_ids, attention_mask, task_name=None):
    B, S = input_ids.shape
    H = CFG["hidden"]
    M = B * S

    # Embedding gather (glue in XLA; everything after this is one Pallas kernel).
    emb = params["tok_emb"][input_ids] + params["pos_emb"][:S][None, :, :]     # [B, S, H]
    x = emb.reshape(M, H).astype(jnp.float32)

    # Combined additive attention bias: block-diagonal per batch + -1e9 on padded keys.
    # TODO(synk): for long sequences, replace the [M, M] block-diagonal mask with a
    # per-batch in-kernel loop to avoid O(B^2 S^2) wasted score compute.
    batch_id = jnp.repeat(jnp.arange(B, dtype=jnp.int32), S)                    # [M]
    keep_key = attention_mask.reshape(M) != 0                                   # [M]
    allowed = (batch_id[:, None] == batch_id[None, :]) & keep_key[None, :]      # [M, M]
    bias = jnp.where(allowed, 0.0, -1e9).astype(jnp.float32)

    logits_all = fused_forward(x, bias, params)                                 # [M, Ntot]
    all_logits = logits_all.reshape(B, S, TOTAL_LABELS)[:, 0, :]                # CLS pooling

    if task_name is not None:
        if task_name not in _TASK_OFFSETS:
            raise ValueError(
                f"Task '{task_name}' not found in model classifiers: {list(_TASK_OFFSETS)}")
        off, n = _TASK_OFFSETS[task_name]
        return all_logits[:, off:off + n]
    return {t: all_logits[:, off:off + n] for t, (off, n) in _TASK_OFFSETS.items()}


# ----------------------------------------------------------------------------
# Main
# ----------------------------------------------------------------------------

if __name__ == "__main__":
    key = jax.random.PRNGKey(0)
    k_param, k_ids = jax.random.split(key)

    B, S = 2, 8
    params = init_params(k_param)
    input_ids = jax.random.randint(k_ids, (B, S), 0, CFG["vocab"], dtype=jnp.int32)
    attention_mask = jnp.ones((B, S), jnp.int32).at[1, 6:].set(0)   # pad tail of row 1

    # Dict-of-tasks path (task_name=None), matching the PyTorch forward.
    logits = forward(params, input_ids, attention_mask, task_name=None)
    logits = jax.block_until_ready(logits)

    # Single-task path as well.
    single = forward(params, input_ids, attention_mask, task_name="scotus")
    single = jax.block_until_ready(single)

    assert set(logits.keys()) == set(TASK_LABELS.keys())
    for task, n_labels in TASK_LABELS.items():
        assert logits[task].shape == (B, n_labels)
        assert bool(jnp.all(jnp.isfinite(logits[task])))
    assert single.shape == (B, TASK_LABELS["scotus"])
    assert bool(jnp.all(jnp.isfinite(single)))

    print("KERNEL_OK")
</pallas_src>

<mosaic_0001>
module attributes {stable_mosaic.version = 11 : i64} {
  func.func @fused_forward_kernel(%arg0: memref<16x32xf32, #tpu.memory_space<vmem>>, %arg1: memref<16x16xf32, #tpu.memory_space<vmem>>, %arg2: memref<1x32xf32, #tpu.memory_space<vmem>>, %arg3: memref<1x32xf32, #tpu.memory_space<vmem>>, %arg4: memref<2x32x96xbf16, #tpu.memory_space<vmem>>, %arg5: memref<2x1x96xf32, #tpu.memory_space<vmem>>, %arg6: memref<2x32x32xbf16, #tpu.memory_space<vmem>>, %arg7: memref<2x1x32xf32, #tpu.memory_space<vmem>>, %arg8: memref<2x1x32xf32, #tpu.memory_space<vmem>>, %arg9: memref<2x1x32xf32, #tpu.memory_space<vmem>>, %arg10: memref<2x32x64xbf16, #tpu.memory_space<vmem>>, %arg11: memref<2x1x64xf32, #tpu.memory_space<vmem>>, %arg12: memref<2x64x32xbf16, #tpu.memory_space<vmem>>, %arg13: memref<2x1x32xf32, #tpu.memory_space<vmem>>, %arg14: memref<2x1x32xf32, #tpu.memory_space<vmem>>, %arg15: memref<2x1x32xf32, #tpu.memory_space<vmem>>, %arg16: memref<32x8xbf16, #tpu.memory_space<vmem>>, %arg17: memref<1x8xf32, #tpu.memory_space<vmem>>, %arg18: memref<16x8xf32, #tpu.memory_space<vmem>>) attributes {dimension_semantics = [], scalar_prefetch = 0 : i64, scratch_operands = 0 : i64, tpu.core_type = #tpu.core_type<tc>} {
    %c0 = arith.constant 0 : index
    %c0_0 = arith.constant 0 : index
    %0 = vector.load %arg0[%c0, %c0_0] : memref<16x32xf32, #tpu.memory_space<vmem>>, vector<16x32xf32>
    %c0_1 = arith.constant 0 : index
    %c0_2 = arith.constant 0 : index
    %1 = vector.load %arg2[%c0_1, %c0_2] : memref<1x32xf32, #tpu.memory_space<vmem>>, vector<1x32xf32>
    %c0_3 = arith.constant 0 : index
    %c0_4 = arith.constant 0 : index
    %2 = vector.load %arg3[%c0_3, %c0_4] : memref<1x32xf32, #tpu.memory_space<vmem>>, vector<1x32xf32>
    %cst = arith.constant dense<0.000000e+00> : vector<16xf32>
    %3 = vector.multi_reduction <add>, %0, %cst [1] : vector<16x32xf32> to vector<16xf32>
    %4 = vector.shape_cast %3 : vector<16xf32> to vector<16x1xf32>
    %cst_5 = arith.constant 3.200000e+01 : f32
    %5 = vector.broadcast %cst_5 : f32 to vector<16x1xf32>
    %6 = arith.divf %4, %5 : vector<16x1xf32>
    %7 = vector.broadcast %6 : vector<16x1xf32> to vector<16x32xf32>
    %8 = arith.subf %0, %7 : vector<16x32xf32>
    %9 = vector.broadcast %6 : vector<16x1xf32> to vector<16x32xf32>
    %10 = arith.subf %0, %9 : vector<16x32xf32>
    %11 = arith.mulf %8, %10 : vector<16x32xf32>
    %cst_6 = arith.constant dense<0.000000e+00> : vector<16xf32>
    %12 = vector.multi_reduction <add>, %11, %cst_6 [1] : vector<16x32xf32> to vector<16xf32>
    %13 = vector.shape_cast %12 : vector<16xf32> to vector<16x1xf32>
    %cst_7 = arith.constant 3.200000e+01 : f32
    %14 = vector.broadcast %cst_7 : f32 to vector<16x1xf32>
    %15 = arith.divf %13, %14 : vector<16x1xf32>
    %16 = vector.broadcast %6 : vector<16x1xf32> to vector<16x32xf32>
    %17 = arith.subf %0, %16 : vector<16x32xf32>
    %cst_8 = arith.constant 9.99999996E-13 : f32
    %18 = vector.broadcast %cst_8 : f32 to vector<16x1xf32>
    %19 = arith.addf %15, %18 : vector<16x1xf32>
    %20 = math.rsqrt %19 : vector<16x1xf32>
    %21 = vector.broadcast %20 : vector<16x1xf32> to vector<16x32xf32>
    %22 = arith.mulf %17, %21 : vector<16x32xf32>
    %23 = vector.broadcast %1 : vector<1x32xf32> to vector<16x32xf32>
    %24 = arith.mulf %22, %23 : vector<16x32xf32>
    %25 = vector.broadcast %2 : vector<1x32xf32> to vector<16x32xf32>
    %26 = arith.addf %24, %25 : vector<16x32xf32>
    %c0_9 = arith.constant 0 : index
    %c0_10 = arith.constant 0 : index
    %27 = vector.load %arg1[%c0_9, %c0_10] : memref<16x16xf32, #tpu.memory_space<vmem>>, vector<16x16xf32>
    %28 = arith.truncf %26 : vector<16x32xf32> to vector<16x32xbf16>
    %c0_11 = arith.constant 0 : index
    %c0_12 = arith.constant 0 : index
    %c0_13 = arith.constant 0 : index
    %29 = vector.load %arg4[%c0_11, %c0_12, %c0_13] : memref<2x32x96xbf16, #tpu.memory_space<vmem>>, vector<1x32x96xbf16>
    %30 = vector.shape_cast %29 : vector<1x32x96xbf16> to vector<32x96xbf16>
    %cst_14 = arith.constant dense<0.000000e+00> : vector<16x96xf32>
    %31 = tpu.matmul %28, %30, %cst_14 {dimension_numbers = #tpu.dot_dimension_numbers<[1], [0], [0], [1], [0, 0, 1, 1], [], []>} : vector<16x32xbf16>, vector<32x96xbf16>, vector<16x96xf32> -> vector<16x96xf32>
    %c0_15 = arith.constant 0 : index
    %c0_16 = arith.constant 0 : index
    %c0_17 = arith.constant 0 : index
    %32 = vector.load %arg5[%c0_15, %c0_16, %c0_17] : memref<2x1x96xf32, #tpu.memory_space<vmem>>, vector<1x1x96xf32>
    %33 = vector.shape_cast %32 : vector<1x1x96xf32> to vector<1x96xf32>
    %34 = vector.broadcast %33 : vector<1x96xf32> to vector<16x96xf32>
    %35 = arith.addf %31, %34 : vector<16x96xf32>
    %c0_18 = arith.constant 0 : index
    %c0_19 = arith.constant 0 : index
    %c0_20 = arith.constant 0 : index
    %36 = vector.load %arg6[%c0_18, %c0_19, %c0_20] : memref<2x32x32xbf16, #tpu.memory_space<vmem>>, vector<1x32x32xbf16>
    %37 = vector.shape_cast %36 : vector<1x32x32xbf16> to vector<32x32xbf16>
    %cst_21 = arith.constant 0.000000e+00 : f32
    %38 = vector.broadcast %cst_21 : f32 to vector<16x32xf32>
    %39 = vector.extract_strided_slice %35 {offsets = [0, 0], sizes = [16, 16], strides = [1, 1]} : vector<16x96xf32> to vector<16x16xf32>
    %cst_22 = arith.constant 2.500000e-01 : f32
    %40 = vector.broadcast %cst_22 : f32 to vector<16x16xf32>
    %41 = arith.mulf %39, %40 : vector<16x16xf32>
    %42 = arith.truncf %41 : vector<16x16xf32> to vector<16x16xbf16>
    %43 = vector.extract_strided_slice %35 {offsets = [0, 32], sizes = [16, 16], strides = [1, 1]} : vector<16x96xf32> to vector<16x16xf32>
    %44 = arith.truncf %43 : vector<16x16xf32> to vector<16x16xbf16>
    %45 = vector.extract_strided_slice %35 {offsets = [0, 64], sizes = [16, 16], strides = [1, 1]} : vector<16x96xf32> to vector<16x16xf32>
    %46 = arith.truncf %45 : vector<16x16xf32> to vector<16x16xbf16>
    %cst_23 = arith.constant dense<0.000000e+00> : vector<16x16xf32>
    %47 = tpu.matmul %42, %44, %cst_23 {dimension_numbers = #tpu.dot_dimension_numbers<[1], [1], [0], [0], [0, 0, 1, 0], [], []>} : vector<16x16xbf16>, vector<16x16xbf16>, vector<16x16xf32> -> vector<16x16xf32>
    %48 = arith.addf %47, %27 : vector<16x16xf32>
    %cst_24 = arith.constant dense<0xFF800000> : vector<16xf32>
    %49 = vector.multi_reduction <maximumf>, %48, %cst_24 [1] : vector<16x16xf32> to vector<16xf32>
    %50 = vector.shape_cast %49 : vector<16xf32> to vector<16x1xf32>
    %51 = vector.broadcast %50 : vector<16x1xf32> to vector<16x16xf32>
    %52 = arith.subf %48, %51 : vector<16x16xf32>
    %53 = math.exp %52 : vector<16x16xf32>
    %cst_25 = arith.constant dense<0.000000e+00> : vector<16xf32>
    %54 = vector.multi_reduction <add>, %53, %cst_25 [1] : vector<16x16xf32> to vector<16xf32>
    %55 = vector.shape_cast %54 : vector<16xf32> to vector<16x1xf32>
    %56 = tpu.reciprocal %55 {approx = true} : vector<16x1xf32> -> vector<16x1xf32>
    %57 = vector.broadcast %56 : vector<16x1xf32> to vector<16x16xf32>
    %58 = arith.mulf %53, %57 : vector<16x16xf32>
    %59 = arith.truncf %58 : vector<16x16xf32> to vector<16x16xbf16>
    %cst_26 = arith.constant dense<0.000000e+00> : vector<16x16xf32>
    %60 = tpu.matmul %59, %46, %cst_26 {dimension_numbers = #tpu.dot_dimension_numbers<[1], [0], [0], [1], [0, 0, 1, 1], [], []>} : vector<16x16xbf16>, vector<16x16xbf16>, vector<16x16xf32> -> vector<16x16xf32>
    %61 = arith.truncf %60 : vector<16x16xf32> to vector<16x16xbf16>
    %62 = vector.extract_strided_slice %37 {offsets = [0, 0], sizes = [16, 32], strides = [1, 1]} : vector<32x32xbf16> to vector<16x32xbf16>
    %cst_27 = arith.constant dense<0.000000e+00> : vector<16x32xf32>
    %63 = tpu.matmul %61, %62, %cst_27 {dimension_numbers = #tpu.dot_dimension_numbers<[1], [0], [0], [1], [0, 0, 1, 1], [], []>} : vector<16x16xbf16>, vector<16x32xbf16>, vector<16x32xf32> -> vector<16x32xf32>
    %64 = arith.addf %38, %63 : vector<16x32xf32>
    %65 = vector.extract_strided_slice %35 {offsets = [0, 16], sizes = [16, 16], strides = [1, 1]} : vector<16x96xf32> to vector<16x16xf32>
    %cst_28 = arith.constant 2.500000e-01 : f32
    %66 = vector.broadcast %cst_28 : f32 to vector<16x16xf32>
    %67 = arith.mulf %65, %66 : vector<16x16xf32>
    %68 = arith.truncf %67 : vector<16x16xf32> to vector<16x16xbf16>
    %69 = vector.extract_strided_slice %35 {offsets = [0, 48], sizes = [16, 16], strides = [1, 1]} : vector<16x96xf32> to vector<16x16xf32>
    %70 = arith.truncf %69 : vector<16x16xf32> to vector<16x16xbf16>
    %71 = vector.extract_strided_slice %35 {offsets = [0, 80], sizes = [16, 16], strides = [1, 1]} : vector<16x96xf32> to vector<16x16xf32>
    %72 = arith.truncf %71 : vector<16x16xf32> to vector<16x16xbf16>
    %cst_29 = arith.constant dense<0.000000e+00> : vector<16x16xf32>
    %73 = tpu.matmul %68, %70, %cst_29 {dimension_numbers = #tpu.dot_dimension_numbers<[1], [1], [0], [0], [0, 0, 1, 0], [], []>} : vector<16x16xbf16>, vector<16x16xbf16>, vector<16x16xf32> -> vector<16x16xf32>
    %74 = arith.addf %73, %27 : vector<16x16xf32>
    %cst_30 = arith.constant dense<0xFF800000> : vector<16xf32>
    %75 = vector.multi_reduction <maximumf>, %74, %cst_30 [1] : vector<16x16xf32> to vector<16xf32>
    %76 = vector.shape_cast %75 : vector<16xf32> to vector<16x1xf32>
    %77 = vector.broadcast %76 : vector<16x1xf32> to vector<16x16xf32>
    %78 = arith.subf %74, %77 : vector<16x16xf32>
    %79 = math.exp %78 : vector<16x16xf32>
    %cst_31 = arith.constant dense<0.000000e+00> : vector<16xf32>
    %80 = vector.multi_reduction <add>, %79, %cst_31 [1] : vector<16x16xf32> to vector<16xf32>
    %81 = vector.shape_cast %80 : vector<16xf32> to vector<16x1xf32>
    %82 = tpu.reciprocal %81 {approx = true} : vector<16x1xf32> -> vector<16x1xf32>
    %83 = vector.broadcast %82 : vector<16x1xf32> to vector<16x16xf32>
    %84 = arith.mulf %79, %83 : vector<16x16xf32>
    %85 = arith.truncf %84 : vector<16x16xf32> to vector<16x16xbf16>
    %cst_32 = arith.constant dense<0.000000e+00> : vector<16x16xf32>
    %86 = tpu.matmul %85, %72, %cst_32 {dimension_numbers = #tpu.dot_dimension_numbers<[1], [0], [0], [1], [0, 0, 1, 1], [], []>} : vector<16x16xbf16>, vector<16x16xbf16>, vector<16x16xf32> -> vector<16x16xf32>
    %87 = arith.truncf %86 : vector<16x16xf32> to vector<16x16xbf16>
    %88 = vector.extract_strided_slice %37 {offsets = [16, 0], sizes = [16, 32], strides = [1, 1]} : vector<32x32xbf16> to vector<16x32xbf16>
    %cst_33 = arith.constant dense<0.000000e+00> : vector<16x32xf32>
    %89 = tpu.matmul %87, %88, %cst_33 {dimension_numbers = #tpu.dot_dimension_numbers<[1], [0], [0], [1], [0, 0, 1, 1], [], []>} : vector<16x16xbf16>, vector<16x32xbf16>, vector<16x32xf32> -> vector<16x32xf32>
    %90 = arith.addf %64, %89 : vector<16x32xf32>
    %c0_34 = arith.constant 0 : index
    %c0_35 = arith.constant 0 : index
    %c0_36 = arith.constant 0 : index
    %91 = vector.load %arg7[%c0_34, %c0_35, %c0_36] : memref<2x1x32xf32, #tpu.memory_space<vmem>>, vector<1x1x32xf32>
    %92 = vector.shape_cast %91 : vector<1x1x32xf32> to vector<1x32xf32>
    %93 = vector.broadcast %92 : vector<1x32xf32> to vector<16x32xf32>
    %94 = arith.addf %90, %93 : vector<16x32xf32>
    %95 = arith.addf %94, %26 : vector<16x32xf32>
    %c0_37 = arith.constant 0 : index
    %c0_38 = arith.constant 0 : index
    %c0_39 = arith.constant 0 : index
    %96 = vector.load %arg8[%c0_37, %c0_38, %c0_39] : memref<2x1x32xf32, #tpu.memory_space<vmem>>, vector<1x1x32xf32>
    %97 = vector.shape_cast %96 : vector<1x1x32xf32> to vector<1x32xf32>
    %c0_40 = arith.constant 0 : index
    %c0_41 = arith.constant 0 : index
    %c0_42 = arith.constant 0 : index
    %98 = vector.load %arg9[%c0_40, %c0_41, %c0_42] : memref<2x1x32xf32, #tpu.memory_space<vmem>>, vector<1x1x32xf32>
    %99 = vector.shape_cast %98 : vector<1x1x32xf32> to vector<1x32xf32>
    %cst_43 = arith.constant dense<0.000000e+00> : vector<16xf32>
    %100 = vector.multi_reduction <add>, %95, %cst_43 [1] : vector<16x32xf32> to vector<16xf32>
    %101 = vector.shape_cast %100 : vector<16xf32> to vector<16x1xf32>
    %cst_44 = arith.constant 3.200000e+01 : f32
    %102 = vector.broadcast %cst_44 : f32 to vector<16x1xf32>
    %103 = arith.divf %101, %102 : vector<16x1xf32>
    %104 = vector.broadcast %103 : vector<16x1xf32> to vector<16x32xf32>
    %105 = arith.subf %95, %104 : vector<16x32xf32>
    %106 = vector.broadcast %103 : vector<16x1xf32> to vector<16x32xf32>
    %107 = arith.subf %95, %106 : vector<16x32xf32>
    %108 = arith.mulf %105, %107 : vector<16x32xf32>
    %cst_45 = arith.constant dense<0.000000e+00> : vector<16xf32>
    %109 = vector.multi_reduction <add>, %108, %cst_45 [1] : vector<16x32xf32> to vector<16xf32>
    %110 = vector.shape_cast %109 : vector<16xf32> to vector<16x1xf32>
    %cst_46 = arith.constant 3.200000e+01 : f32
    %111 = vector.broadcast %cst_46 : f32 to vector<16x1xf32>
    %112 = arith.divf %110, %111 : vector<16x1xf32>
    %113 = vector.broadcast %103 : vector<16x1xf32> to vector<16x32xf32>
    %114 = arith.subf %95, %113 : vector<16x32xf32>
    %cst_47 = arith.constant 9.99999996E-13 : f32
    %115 = vector.broadcast %cst_47 : f32 to vector<16x1xf32>
    %116 = arith.addf %112, %115 : vector<16x1xf32>
    %117 = math.rsqrt %116 : vector<16x1xf32>
    %118 = vector.broadcast %117 : vector<16x1xf32> to vector<16x32xf32>
    %119 = arith.mulf %114, %118 : vector<16x32xf32>
    %120 = vector.broadcast %97 : vector<1x32xf32> to vector<16x32xf32>
    %121 = arith.mulf %119, %120 : vector<16x32xf32>
    %122 = vector.broadcast %99 : vector<1x32xf32> to vector<16x32xf32>
    %123 = arith.addf %121, %122 : vector<16x32xf32>
    %124 = arith.truncf %123 : vector<16x32xf32> to vector<16x32xbf16>
    %c0_48 = arith.constant 0 : index
    %c0_49 = arith.constant 0 : index
    %c0_50 = arith.constant 0 : index
    %125 = vector.load %arg10[%c0_48, %c0_49, %c0_50] : memref<2x32x64xbf16, #tpu.memory_space<vmem>>, vector<1x32x64xbf16>
    %126 = vector.shape_cast %125 : vector<1x32x64xbf16> to vector<32x64xbf16>
    %cst_51 = arith.constant dense<0.000000e+00> : vector<16x64xf32>
    %127 = tpu.matmul %124, %126, %cst_51 {dimension_numbers = #tpu.dot_dimension_numbers<[1], [0], [0], [1], [0, 0, 1, 1], [], []>} : vector<16x32xbf16>, vector<32x64xbf16>, vector<16x64xf32> -> vector<16x64xf32>
    %c0_52 = arith.constant 0 : index
    %c0_53 = arith.constant 0 : index
    %c0_54 = arith.constant 0 : index
    %128 = vector.load %arg11[%c0_52, %c0_53, %c0_54] : memref<2x1x64xf32, #tpu.memory_space<vmem>>, vector<1x1x64xf32>
    %129 = vector.shape_cast %128 : vector<1x1x64xf32> to vector<1x64xf32>
    %130 = vector.broadcast %129 : vector<1x64xf32> to vector<16x64xf32>
    %131 = arith.addf %127, %130 : vector<16x64xf32>
    %cst_55 = arith.constant 5.000000e-01 : f32
    %132 = vector.broadcast %cst_55 : f32 to vector<16x64xf32>
    %133 = arith.mulf %132, %131 : vector<16x64xf32>
    %cst_56 = arith.constant 4.471500e-02 : f32
    %134 = vector.broadcast %cst_56 : f32 to vector<16x64xf32>
    %135 = arith.mulf %134, %131 : vector<16x64xf32>
    %136 = arith.mulf %135, %131 : vector<16x64xf32>
    %137 = arith.mulf %136, %131 : vector<16x64xf32>
    %138 = arith.addf %131, %137 : vector<16x64xf32>
    %cst_57 = arith.constant 0.797884583 : f32
    %139 = vector.broadcast %cst_57 : f32 to vector<16x64xf32>
    %140 = arith.mulf %139, %138 : vector<16x64xf32>
    %141 = math.tanh %140 : vector<16x64xf32>
    %cst_58 = arith.constant 1.000000e+00 : f32
    %142 = vector.broadcast %cst_58 : f32 to vector<16x64xf32>
    %143 = arith.addf %142, %141 : vector<16x64xf32>
    %144 = arith.mulf %133, %143 : vector<16x64xf32>
    %145 = arith.truncf %144 : vector<16x64xf32> to vector<16x64xbf16>
    %c0_59 = arith.constant 0 : index
    %c0_60 = arith.constant 0 : index
    %c0_61 = arith.constant 0 : index
    %146 = vector.load %arg12[%c0_59, %c0_60, %c0_61] : memref<2x64x32xbf16, #tpu.memory_space<vmem>>, vector<1x64x32xbf16>
    %147 = vector.shape_cast %146 : vector<1x64x32xbf16> to vector<64x32xbf16>
    %cst_62 = arith.constant dense<0.000000e+00> : vector<16x32xf32>
    %148 = tpu.matmul %145, %147, %cst_62 {dimension_numbers = #tpu.dot_dimension_numbers<[1], [0], [0], [1], [0, 0, 1, 1], [], []>} : vector<16x64xbf16>, vector<64x32xbf16>, vector<16x32xf32> -> vector<16x32xf32>
    %c0_63 = arith.constant 0 : index
    %c0_64 = arith.constant 0 : index
    %c0_65 = arith.constant 0 : index
    %149 = vector.load %arg13[%c0_63, %c0_64, %c0_65] : memref<2x1x32xf32, #tpu.memory_space<vmem>>, vector<1x1x32xf32>
    %150 = vector.shape_cast %149 : vector<1x1x32xf32> to vector<1x32xf32>
    %151 = vector.broadcast %150 : vector<1x32xf32> to vector<16x32xf32>
    %152 = arith.addf %148, %151 : vector<16x32xf32>
    %153 = arith.addf %152, %123 : vector<16x32xf32>
    %c0_66 = arith.constant 0 : index
    %c0_67 = arith.constant 0 : index
    %c0_68 = arith.constant 0 : index
    %154 = vector.load %arg14[%c0_66, %c0_67, %c0_68] : memref<2x1x32xf32, #tpu.memory_space<vmem>>, vector<1x1x32xf32>
    %155 = vector.shape_cast %154 : vector<1x1x32xf32> to vector<1x32xf32>
    %c0_69 = arith.constant 0 : index
    %c0_70 = arith.constant 0 : index
    %c0_71 = arith.constant 0 : index
    %156 = vector.load %arg15[%c0_69, %c0_70, %c0_71] : memref<2x1x32xf32, #tpu.memory_space<vmem>>, vector<1x1x32xf32>
    %157 = vector.shape_cast %156 : vector<1x1x32xf32> to vector<1x32xf32>
    %cst_72 = arith.constant dense<0.000000e+00> : vector<16xf32>
    %158 = vector.multi_reduction <add>, %153, %cst_72 [1] : vector<16x32xf32> to vector<16xf32>
    %159 = vector.shape_cast %158 : vector<16xf32> to vector<16x1xf32>
    %cst_73 = arith.constant 3.200000e+01 : f32
    %160 = vector.broadcast %cst_73 : f32 to vector<16x1xf32>
    %161 = arith.divf %159, %160 : vector<16x1xf32>
    %162 = vector.broadcast %161 : vector<16x1xf32> to vector<16x32xf32>
    %163 = arith.subf %153, %162 : vector<16x32xf32>
    %164 = vector.broadcast %161 : vector<16x1xf32> to vector<16x32xf32>
    %165 = arith.subf %153, %164 : vector<16x32xf32>
    %166 = arith.mulf %163, %165 : vector<16x32xf32>
    %cst_74 = arith.constant dense<0.000000e+00> : vector<16xf32>
    %167 = vector.multi_reduction <add>, %166, %cst_74 [1] : vector<16x32xf32> to vector<16xf32>
    %168 = vector.shape_cast %167 : vector<16xf32> to vector<16x1xf32>
    %cst_75 = arith.constant 3.200000e+01 : f32
    %169 = vector.broadcast %cst_75 : f32 to vector<16x1xf32>
    %170 = arith.divf %168, %169 : vector<16x1xf32>
    %171 = vector.broadcast %161 : vector<16x1xf32> to vector<16x32xf32>
    %172 = arith.subf %153, %171 : vector<16x32xf32>
    %cst_76 = arith.constant 9.99999996E-13 : f32
    %173 = vector.broadcast %cst_76 : f32 to vector<16x1xf32>
    %174 = arith.addf %170, %173 : vector<16x1xf32>
    %175 = math.rsqrt %174 : vector<16x1xf32>
    %176 = vector.broadcast %175 : vector<16x1xf32> to vector<16x32xf32>
    %177 = arith.mulf %172, %176 : vector<16x32xf32>
    %178 = vector.broadcast %155 : vector<1x32xf32> to vector<16x32xf32>
    %179 = arith.mulf %177, %178 : vector<16x32xf32>
    %180 = vector.broadcast %157 : vector<1x32xf32> to vector<16x32xf32>
    %181 = arith.addf %179, %180 : vector<16x32xf32>
    %182 = arith.truncf %181 : vector<16x32xf32> to vector<16x32xbf16>
    %c1 = arith.constant 1 : index
    %c0_77 = arith.constant 0 : index
    %c0_78 = arith.constant 0 : index
    %183 = vector.load %arg4[%c1, %c0_77, %c0_78] : memref<2x32x96xbf16, #tpu.memory_space<vmem>>, vector<1x32x96xbf16>
    %184 = vector.shape_cast %183 : vector<1x32x96xbf16> to vector<32x96xbf16>
    %cst_79 = arith.constant dense<0.000000e+00> : vector<16x96xf32>
    %185 = tpu.matmul %182, %184, %cst_79 {dimension_numbers = #tpu.dot_dimension_numbers<[1], [0], [0], [1], [0, 0, 1, 1], [], []>} : vector<16x32xbf16>, vector<32x96xbf16>, vector<16x96xf32> -> vector<16x96xf32>
    %c1_80 = arith.constant 1 : index
    %c0_81 = arith.constant 0 : index
    %c0_82 = arith.constant 0 : index
    %186 = vector.load %arg5[%c1_80, %c0_81, %c0_82] : memref<2x1x96xf32, #tpu.memory_space<vmem>>, vector<1x1x96xf32>
    %187 = vector.shape_cast %186 : vector<1x1x96xf32> to vector<1x96xf32>
    %188 = vector.broadcast %187 : vector<1x96xf32> to vector<16x96xf32>
    %189 = arith.addf %185, %188 : vector<16x96xf32>
    %c1_83 = arith.constant 1 : index
    %c0_84 = arith.constant 0 : index
    %c0_85 = arith.constant 0 : index
    %190 = vector.load %arg6[%c1_83, %c0_84, %c0_85] : memref<2x32x32xbf16, #tpu.memory_space<vmem>>, vector<1x32x32xbf16>
    %191 = vector.shape_cast %190 : vector<1x32x32xbf16> to vector<32x32xbf16>
    %cst_86 = arith.constant 0.000000e+00 : f32
    %192 = vector.broadcast %cst_86 : f32 to vector<16x32xf32>
    %193 = vector.extract_strided_slice %189 {offsets = [0, 0], sizes = [16, 16], strides = [1, 1]} : vector<16x96xf32> to vector<16x16xf32>
    %cst_87 = arith.constant 2.500000e-01 : f32
    %194 = vector.broadcast %cst_87 : f32 to vector<16x16xf32>
    %195 = arith.mulf %193, %194 : vector<16x16xf32>
    %196 = arith.truncf %195 : vector<16x16xf32> to vector<16x16xbf16>
    %197 = vector.extract_strided_slice %189 {offsets = [0, 32], sizes = [16, 16], strides = [1, 1]} : vector<16x96xf32> to vector<16x16xf32>
    %198 = arith.truncf %197 : vector<16x16xf32> to vector<16x16xbf16>
    %199 = vector.extract_strided_slice %189 {offsets = [0, 64], sizes = [16, 16], strides = [1, 1]} : vector<16x96xf32> to vector<16x16xf32>
    %200 = arith.truncf %199 : vector<16x16xf32> to vector<16x16xbf16>
    %cst_88 = arith.constant dense<0.000000e+00> : vector<16x16xf32>
    %201 = tpu.matmul %196, %198, %cst_88 {dimension_numbers = #tpu.dot_dimension_numbers<[1], [1], [0], [0], [0, 0, 1, 0], [], []>} : vector<16x16xbf16>, vector<16x16xbf16>, vector<16x16xf32> -> vector<16x16xf32>
    %202 = arith.addf %201, %27 : vector<16x16xf32>
    %cst_89 = arith.constant dense<0xFF800000> : vector<16xf32>
    %203 = vector.multi_reduction <maximumf>, %202, %cst_89 [1] : vector<16x16xf32> to vector<16xf32>
    %204 = vector.shape_cast %203 : vector<16xf32> to vector<16x1xf32>
    %205 = vector.broadcast %204 : vector<16x1xf32> to vector<16x16xf32>
    %206 = arith.subf %202, %205 : vector<16x16xf32>
    %207 = math.exp %206 : vector<16x16xf32>
    %cst_90 = arith.constant dense<0.000000e+00> : vector<16xf32>
    %208 = vector.multi_reduction <add>, %207, %cst_90 [1] : vector<16x16xf32> to vector<16xf32>
    %209 = vector.shape_cast %208 : vector<16xf32> to vector<16x1xf32>
    %210 = tpu.reciprocal %209 {approx = true} : vector<16x1xf32> -> vector<16x1xf32>
    %211 = vector.broadcast %210 : vector<16x1xf32> to vector<16x16xf32>
    %212 = arith.mulf %207, %211 : vector<16x16xf32>
    %213 = arith.truncf %212 : vector<16x16xf32> to vector<16x16xbf16>
    %cst_91 = arith.constant dense<0.000000e+00> : vector<16x16xf32>
    %214 = tpu.matmul %213, %200, %cst_91 {dimension_numbers = #tpu.dot_dimension_numbers<[1], [0], [0], [1], [0, 0, 1, 1], [], []>} : vector<16x16xbf16>, vector<16x16xbf16>, vector<16x16xf32> -> vector<16x16xf32>
    %215 = arith.truncf %214 : vector<16x16xf32> to vector<16x16xbf16>
    %216 = vector.extract_strided_slice %191 {offsets = [0, 0], sizes = [16, 32], strides = [1, 1]} : vector<32x32xbf16> to vector<16x32xbf16>
    %cst_92 = arith.constant dense<0.000000e+00> : vector<16x32xf32>
    %217 = tpu.matmul %215, %216, %cst_92 {dimension_numbers = #tpu.dot_dimension_numbers<[1], [0], [0], [1], [0, 0, 1, 1], [], []>} : vector<16x16xbf16>, vector<16x32xbf16>, vector<16x32xf32> -> vector<16x32xf32>
    %218 = arith.addf %192, %217 : vector<16x32xf32>
    %219 = vector.extract_strided_slice %189 {offsets = [0, 16], sizes = [16, 16], strides = [1, 1]} : vector<16x96xf32> to vector<16x16xf32>
    %cst_93 = arith.constant 2.500000e-01 : f32
    %220 = vector.broadcast %cst_93 : f32 to vector<16x16xf32>
    %221 = arith.mulf %219, %220 : vector<16x16xf32>
    %222 = arith.truncf %221 : vector<16x16xf32> to vector<16x16xbf16>
    %223 = vector.extract_strided_slice %189 {offsets = [0, 48], sizes = [16, 16], strides = [1, 1]} : vector<16x96xf32> to vector<16x16xf32>
    %224 = arith.truncf %223 : vector<16x16xf32> to vector<16x16xbf16>
    %225 = vector.extract_strided_slice %189 {offsets = [0, 80], sizes = [16, 16], strides = [1, 1]} : vector<16x96xf32> to vector<16x16xf32>
    %226 = arith.truncf %225 : vector<16x16xf32> to vector<16x16xbf16>
    %cst_94 = arith.constant dense<0.000000e+00> : vector<16x16xf32>
    %227 = tpu.matmul %222, %224, %cst_94 {dimension_numbers = #tpu.dot_dimension_numbers<[1], [1], [0], [0], [0, 0, 1, 0], [], []>} : vector<16x16xbf16>, vector<16x16xbf16>, vector<16x16xf32> -> vector<16x16xf32>
    %228 = arith.addf %227, %27 : vector<16x16xf32>
    %cst_95 = arith.constant dense<0xFF800000> : vector<16xf32>
    %229 = vector.multi_reduction <maximumf>, %228, %cst_95 [1] : vector<16x16xf32> to vector<16xf32>
    %230 = vector.shape_cast %229 : vector<16xf32> to vector<16x1xf32>
    %231 = vector.broadcast %230 : vector<16x1xf32> to vector<16x16xf32>
    %232 = arith.subf %228, %231 : vector<16x16xf32>
    %233 = math.exp %232 : vector<16x16xf32>
    %cst_96 = arith.constant dense<0.000000e+00> : vector<16xf32>
    %234 = vector.multi_reduction <add>, %233, %cst_96 [1] : vector<16x16xf32> to vector<16xf32>
    %235 = vector.shape_cast %234 : vector<16xf32> to vector<16x1xf32>
    %236 = tpu.reciprocal %235 {approx = true} : vector<16x1xf32> -> vector<16x1xf32>
    %237 = vector.broadcast %236 : vector<16x1xf32> to vector<16x16xf32>
    %238 = arith.mulf %233, %237 : vector<16x16xf32>
    %239 = arith.truncf %238 : vector<16x16xf32> to vector<16x16xbf16>
    %cst_97 = arith.constant dense<0.000000e+00> : vector<16x16xf32>
    %240 = tpu.matmul %239, %226, %cst_97 {dimension_numbers = #tpu.dot_dimension_numbers<[1], [0], [0], [1], [0, 0, 1, 1], [], []>} : vector<16x16xbf16>, vector<16x16xbf16>, vector<16x16xf32> -> vector<16x16xf32>
    %241 = arith.truncf %240 : vector<16x16xf32> to vector<16x16xbf16>
    %242 = vector.extract_strided_slice %191 {offsets = [16, 0], sizes = [16, 32], strides = [1, 1]} : vector<32x32xbf16> to vector<16x32xbf16>
    %cst_98 = arith.constant dense<0.000000e+00> : vector<16x32xf32>
    %243 = tpu.matmul %241, %242, %cst_98 {dimension_numbers = #tpu.dot_dimension_numbers<[1], [0], [0], [1], [0, 0, 1, 1], [], []>} : vector<16x16xbf16>, vector<16x32xbf16>, vector<16x32xf32> -> vector<16x32xf32>
    %244 = arith.addf %218, %243 : vector<16x32xf32>
    %c1_99 = arith.constant 1 : index
    %c0_100 = arith.constant 0 : index
    %c0_101 = arith.constant 0 : index
    %245 = vector.load %arg7[%c1_99, %c0_100, %c0_101] : memref<2x1x32xf32, #tpu.memory_space<vmem>>, vector<1x1x32xf32>
    %246 = vector.shape_cast %245 : vector<1x1x32xf32> to vector<1x32xf32>
    %247 = vector.broadcast %246 : vector<1x32xf32> to vector<16x32xf32>
    %248 = arith.addf %244, %247 : vector<16x32xf32>
    %249 = arith.addf %248, %181 : vector<16x32xf32>
    %c1_102 = arith.constant 1 : index
    %c0_103 = arith.constant 0 : index
    %c0_104 = arith.constant 0 : index
    %250 = vector.load %arg8[%c1_102, %c0_103, %c0_104] : memref<2x1x32xf32, #tpu.memory_space<vmem>>, vector<1x1x32xf32>
    %251 = vector.shape_cast %250 : vector<1x1x32xf32> to vector<1x32xf32>
    %c1_105 = arith.constant 1 : index
    %c0_106 = arith.constant 0 : index
    %c0_107 = arith.constant 0 : index
    %252 = vector.load %arg9[%c1_105, %c0_106, %c0_107] : memref<2x1x32xf32, #tpu.memory_space<vmem>>, vector<1x1x32xf32>
    %253 = vector.shape_cast %252 : vector<1x1x32xf32> to vector<1x32xf32>
    %cst_108 = arith.constant dense<0.000000e+00> : vector<16xf32>
    %254 = vector.multi_reduction <add>, %249, %cst_108 [1] : vector<16x32xf32> to vector<16xf32>
    %255 = vector.shape_cast %254 : vector<16xf32> to vector<16x1xf32>
    %cst_109 = arith.constant 3.200000e+01 : f32
    %256 = vector.broadcast %cst_109 : f32 to vector<16x1xf32>
    %257 = arith.divf %255, %256 : vector<16x1xf32>
    %258 = vector.broadcast %257 : vector<16x1xf32> to vector<16x32xf32>
    %259 = arith.subf %249, %258 : vector<16x32xf32>
    %260 = vector.broadcast %257 : vector<16x1xf32> to vector<16x32xf32>
    %261 = arith.subf %249, %260 : vector<16x32xf32>
    %262 = arith.mulf %259, %261 : vector<16x32xf32>
    %cst_110 = arith.constant dense<0.000000e+00> : vector<16xf32>
    %263 = vector.multi_reduction <add>, %262, %cst_110 [1] : vector<16x32xf32> to vector<16xf32>
    %264 = vector.shape_cast %263 : vector<16xf32> to vector<16x1xf32>
    %cst_111 = arith.constant 3.200000e+01 : f32
    %265 = vector.broadcast %cst_111 : f32 to vector<16x1xf32>
    %266 = arith.divf %264, %265 : vector<16x1xf32>
    %267 = vector.broadcast %257 : vector<16x1xf32> to vector<16x32xf32>
    %268 = arith.subf %249, %267 : vector<16x32xf32>
    %cst_112 = arith.constant 9.99999996E-13 : f32
    %269 = vector.broadcast %cst_112 : f32 to vector<16x1xf32>
    %270 = arith.addf %266, %269 : vector<16x1xf32>
    %271 = math.rsqrt %270 : vector<16x1xf32>
    %272 = vector.broadcast %271 : vector<16x1xf32> to vector<16x32xf32>
    %273 = arith.mulf %268, %272 : vector<16x32xf32>
    %274 = vector.broadcast %251 : vector<1x32xf32> to vector<16x32xf32>
    %275 = arith.mulf %273, %274 : vector<16x32xf32>
    %276 = vector.broadcast %253 : vector<1x32xf32> to vector<16x32xf32>
    %277 = arith.addf %275, %276 : vector<16x32xf32>
    %278 = arith.truncf %277 : vector<16x32xf32> to vector<16x32xbf16>
    %c1_113 = arith.constant 1 : index
    %c0_114 = arith.constant 0 : index
    %c0_115 = arith.constant 0 : index
    %279 = vector.load %arg10[%c1_113, %c0_114, %c0_115] : memref<2x32x64xbf16, #tpu.memory_space<vmem>>, vector<1x32x64xbf16>
    %280 = vector.shape_cast %279 : vector<1x32x64xbf16> to vector<32x64xbf16>
    %cst_116 = arith.constant dense<0.000000e+00> : vector<16x64xf32>
    %281 = tpu.matmul %278, %280, %cst_116 {dimension_numbers = #tpu.dot_dimension_numbers<[1], [0], [0], [1], [0, 0, 1, 1], [], []>} : vector<16x32xbf16>, vector<32x64xbf16>, vector<16x64xf32> -> vector<16x64xf32>
    %c1_117 = arith.constant 1 : index
    %c0_118 = arith.constant 0 : index
    %c0_119 = arith.constant 0 : index
    %282 = vector.load %arg11[%c1_117, %c0_118, %c0_119] : memref<2x1x64xf32, #tpu.memory_space<vmem>>, vector<1x1x64xf32>
    %283 = vector.shape_cast %282 : vector<1x1x64xf32> to vector<1x64xf32>
    %284 = vector.broadcast %283 : vector<1x64xf32> to vector<16x64xf32>
    %285 = arith.addf %281, %284 : vector<16x64xf32>
    %cst_120 = arith.constant 5.000000e-01 : f32
    %286 = vector.broadcast %cst_120 : f32 to vector<16x64xf32>
    %287 = arith.mulf %286, %285 : vector<16x64xf32>
    %cst_121 = arith.constant 4.471500e-02 : f32
    %288 = vector.broadcast %cst_121 : f32 to vector<16x64xf32>
    %289 = arith.mulf %288, %285 : vector<16x64xf32>
    %290 = arith.mulf %289, %285 : vector<16x64xf32>
    %291 = arith.mulf %290, %285 : vector<16x64xf32>
    %292 = arith.addf %285, %291 : vector<16x64xf32>
    %cst_122 = arith.constant 0.797884583 : f32
    %293 = vector.broadcast %cst_122 : f32 to vector<16x64xf32>
    %294 = arith.mulf %293, %292 : vector<16x64xf32>
    %295 = math.tanh %294 : vector<16x64xf32>
    %cst_123 = arith.constant 1.000000e+00 : f32
    %296 = vector.broadcast %cst_123 : f32 to vector<16x64xf32>
    %297 = arith.addf %296, %295 : vector<16x64xf32>
    %298 = arith.mulf %287, %297 : vector<16x64xf32>
    %299 = arith.truncf %298 : vector<16x64xf32> to vector<16x64xbf16>
    %c1_124 = arith.constant 1 : index
    %c0_125 = arith.constant 0 : index
    %c0_126 = arith.constant 0 : index
    %300 = vector.load %arg12[%c1_124, %c0_125, %c0_126] : memref<2x64x32xbf16, #tpu.memory_space<vmem>>, vector<1x64x32xbf16>
    %301 = vector.shape_cast %300 : vector<1x64x32xbf16> to vector<64x32xbf16>
    %cst_127 = arith.constant dense<0.000000e+00> : vector<16x32xf32>
    %302 = tpu.matmul %299, %301, %cst_127 {dimension_numbers = #tpu.dot_dimension_numbers<[1], [0], [0], [1], [0, 0, 1, 1], [], []>} : vector<16x64xbf16>, vector<64x32xbf16>, vector<16x32xf32> -> vector<16x32xf32>
    %c1_128 = arith.constant 1 : index
    %c0_129 = arith.constant 0 : index
    %c0_130 = arith.constant 0 : index
    %303 = vector.load %arg13[%c1_128, %c0_129, %c0_130] : memref<2x1x32xf32, #tpu.memory_space<vmem>>, vector<1x1x32xf32>
    %304 = vector.shape_cast %303 : vector<1x1x32xf32> to vector<1x32xf32>
    %305 = vector.broadcast %304 : vector<1x32xf32> to vector<16x32xf32>
    %306 = arith.addf %302, %305 : vector<16x32xf32>
    %307 = arith.addf %306, %277 : vector<16x32xf32>
    %c1_131 = arith.constant 1 : index
    %c0_132 = arith.constant 0 : index
    %c0_133 = arith.constant 0 : index
    %308 = vector.load %arg14[%c1_131, %c0_132, %c0_133] : memref<2x1x32xf32, #tpu.memory_space<vmem>>, vector<1x1x32xf32>
    %309 = vector.shape_cast %308 : vector<1x1x32xf32> to vector<1x32xf32>
    %c1_134 = arith.constant 1 : index
    %c0_135 = arith.constant 0 : index
    %c0_136 = arith.constant 0 : index
    %310 = vector.load %arg15[%c1_134, %c0_135, %c0_136] : memref<2x1x32xf32, #tpu.memory_space<vmem>>, vector<1x1x32xf32>
    %311 = vector.shape_cast %310 : vector<1x1x32xf32> to vector<1x32xf32>
    %cst_137 = arith.constant dense<0.000000e+00> : vector<16xf32>
    %312 = vector.multi_reduction <add>, %307, %cst_137 [1] : vector<16x32xf32> to vector<16xf32>
    %313 = vector.shape_cast %312 : vector<16xf32> to vector<16x1xf32>
    %cst_138 = arith.constant 3.200000e+01 : f32
    %314 = vector.broadcast %cst_138 : f32 to vector<16x1xf32>
    %315 = arith.divf %313, %314 : vector<16x1xf32>
    %316 = vector.broadcast %315 : vector<16x1xf32> to vector<16x32xf32>
    %317 = arith.subf %307, %316 : vector<16x32xf32>
    %318 = vector.broadcast %315 : vector<16x1xf32> to vector<16x32xf32>
    %319 = arith.subf %307, %318 : vector<16x32xf32>
    %320 = arith.mulf %317, %319 : vector<16x32xf32>
    %cst_139 = arith.constant dense<0.000000e+00> : vector<16xf32>
    %321 = vector.multi_reduction <add>, %320, %cst_139 [1] : vector<16x32xf32> to vector<16xf32>
    %322 = vector.shape_cast %321 : vector<16xf32> to vector<16x1xf32>
    %cst_140 = arith.constant 3.200000e+01 : f32
    %323 = vector.broadcast %cst_140 : f32 to vector<16x1xf32>
    %324 = arith.divf %322, %323 : vector<16x1xf32>
    %325 = vector.broadcast %315 : vector<16x1xf32> to vector<16x32xf32>
    %326 = arith.subf %307, %325 : vector<16x32xf32>
    %cst_141 = arith.constant 9.99999996E-13 : f32
    %327 = vector.broadcast %cst_141 : f32 to vector<16x1xf32>
    %328 = arith.addf %324, %327 : vector<16x1xf32>
    %329 = math.rsqrt %328 : vector<16x1xf32>
    %330 = vector.broadcast %329 : vector<16x1xf32> to vector<16x32xf32>
    %331 = arith.mulf %326, %330 : vector<16x32xf32>
    %332 = vector.broadcast %309 : vector<1x32xf32> to vector<16x32xf32>
    %333 = arith.mulf %331, %332 : vector<16x32xf32>
    %334 = vector.broadcast %311 : vector<1x32xf32> to vector<16x32xf32>
    %335 = arith.addf %333, %334 : vector<16x32xf32>
    %336 = arith.truncf %335 : vector<16x32xf32> to vector<16x32xbf16>
    %c0_142 = arith.constant 0 : index
    %c0_143 = arith.constant 0 : index
    %337 = vector.load %arg16[%c0_142, %c0_143] : memref<32x8xbf16, #tpu.memory_space<vmem>>, vector<32x8xbf16>
    %cst_144 = arith.constant dense<0.000000e+00> : vector<16x8xf32>
    %338 = tpu.matmul %336, %337, %cst_144 {dimension_numbers = #tpu.dot_dimension_numbers<[1], [0], [0], [1], [0, 0, 1, 1], [], []>} : vector<16x32xbf16>, vector<32x8xbf16>, vector<16x8xf32> -> vector<16x8xf32>
    %c0_145 = arith.constant 0 : index
    %c0_146 = arith.constant 0 : index
    %339 = vector.load %arg17[%c0_145, %c0_146] : memref<1x8xf32, #tpu.memory_space<vmem>>, vector<1x8xf32>
    %340 = vector.broadcast %339 : vector<1x8xf32> to vector<16x8xf32>
    %341 = arith.addf %338, %340 : vector<16x8xf32>
    %c0_147 = arith.constant 0 : index
    %c0_148 = arith.constant 0 : index
    %342 = vector.load %arg18[%c0_147, %c0_148] : memref<16x8xf32, #tpu.memory_space<vmem>>, vector<16x8xf32>
    tpu.vector_store %arg18[%c0_147, %c0_148], %341 {strides = array<i32>} : memref<16x8xf32, #tpu.memory_space<vmem>>, vector<16x8xf32>,
    return
  }
}

</mosaic_0001>

<bundles_post_ra>
// kernel: forward.1
= control target key start
LH: loop header
LB: loop body
LE: loop exit
PB: predicated region body
PF: predicated region fallthrough
CT: control target
= control target key end

     0   :  { %vm64_vm0 = vcmask 261120   ;;  %v1943_v15 = vmov 0.0   ;;  %vm1944_vm1 = vmmov 0   ;;  %s1947_s30 = smov 112   ;;  %vm189_vm2 = vcmask 130048   ;;  %s1949_s22 = smov 48   ;;  %s2363_s0 = inlined_call_operand.vmem [shape: f32[16,32], index: 0, kind: input, shape index: {}]   ;;  %s2364_s4 = inlined_call_operand.vmem [shape: bf16[2,32,96], index: 4, kind: input, shape index: {}]   ;;  %s2365_s2 = inlined_call_operand.vmem [shape: f32[1,32], index: 2, kind: input, shape index: {}]   ;;  %s2366_s3 = inlined_call_operand.vmem [shape: f32[1,32], index: 3, kind: input, shape index: {}]   ;;  %s2367_s5 = inlined_call_operand.vmem [shape: f32[2,1,96], index: 5, kind: input, shape index: {}]   ;;  %s2368_s1 = inlined_call_operand.vmem [shape: f32[16,16], index: 1, kind: input, shape index: {}]   ;;  %s2369_s6 = inlined_call_operand.vmem [shape: bf16[2,32,32], index: 6, kind: input, shape index: {}]   ;;  %s2370_s7 = inlined_call_operand.vmem [shape: f32[2,1,32], index: 7, kind: input, shape index: {}]   ;;  %s2371_s10 = inlined_call_operand.vmem [shape: bf16[2,32,64], index: 10, kind: input, shape index: {}]   ;;  %s2372_s8 = inlined_call_operand.vmem [shape: f32[2,1,32], index: 8, kind: input, shape index: {}]   ;;  %s2373_s9 = inlined_call_operand.vmem [shape: f32[2,1,32], index: 9, kind: input, shape index: {}]   ;;  %s2374_s12 = inlined_call_operand.vmem [shape: bf16[2,64,32], index: 12, kind: input, shape index: {}]   ;;  %s2375_s11 = inlined_call_operand.vmem [shape: f32[2,1,64], index: 11, kind: input, shape index: {}]   ;;  %s2376_s13 = inlined_call_operand.vmem [shape: f32[2,1,32], index: 13, kind: input, shape index: {}]   ;;  %s2377_s14 = inlined_call_operand.vmem [shape: f32[2,1,32], index: 14, kind: input, shape index: {}]   ;;  %s2378_s15 = inlined_call_operand.vmem [shape: f32[2,1,32], index: 15, kind: input, shape index: {}]   ;;  %s2379_s16 = inlined_call_operand.vmem [shape: bf16[32,8], index: 16, kind: input, shape index: {}]   ;;  %s2380_s17 = inlined_call_operand.vmem [shape: f32[1,8], index: 17, kind: input, shape index: {}]   ;;  %s2381_s18 = inlined_call_operand.vmem [shape: f32[16,8], index: 18, kind: output, shape index: {}]  }
   0x1   :  { %2384 = sst [smem:[#allocation2_spill]] %s2363_s0  ;;  %1718 = vmatprep.subr.bf16.mxu0 %v1943_v15  ;;  %1726 = vmatprep.subr.bf16.mxu1 %v1943_v15  ;;  %v1582_v29 = vld [vmem:[%s2366_s3] ss:$0 sm:$0xff]  ;;  %s1945_s3 = smov 80   ;;  %v2112_v52 = vld [vmem:[%s2368_s1 + $0x8] sm:$0xff]  ;;  %vm712_vm3 = vcmask 523264  }
   0x2   :  { %2385 = sst [smem:[#allocation3_spill]] %s2364_s4  ;;  %s2387_s29 = sld [smem:[#allocation2_spill]]  ;;  %1722 = vmatprep.mubr.msk.bf16.mxu0 %vm1944_vm1, %v1943_v15  ;;  %1728 = vmatprep.mubr.msk.bf16.mxu1 %vm1944_vm1, %v1943_v15  ;;  %v1583_v34 = vld [vmem:[%s2367_s5] ss:$0 sm:$0xff]  ;;  %vm1574_vm4 = vcmask 64512  }
   0x3   :  { %2386 = sst [smem:[#allocation4_spill]] %s2365_s2  ;;  %s2388_s20 = sld [smem:[#allocation3_spill]]  ;;  %v2107_v50 = vld [vmem:[%s2368_s1] sm:$0xff] }
   0x4   :  { %s2389_s24 = sld [smem:[#allocation4_spill]]  ;;  %s1948_s1 = smov 64  }
   0x8   :  { %v60_v0 = vld [vmem:[%s2387_s29] sm:$0xff]  ;;  %v61_v1 = vld [vmem:[%s2387_s29 + $0x8] sm:$0xff]  ;;  %s1946_s29 = smov 96  }
   0x9   :  { %v65_v2 = vsel %vm64_vm0, %v60_v0, 0.0  ;;  %v68_v3 = vsel %vm64_vm0, %v61_v1, 0.0  ;;  %v1861_v14 = vld [vmem:[%s2388_s20] sm:$0xff]   ;;  %v1862_v16 = vld [vmem:[%s2388_s20 + $0x8] sm:$0xff]  }
   0xa   :  { %66 = vadd.xlane.f32.xlu0 %v65_v2  ;;  %1719 = vmatpush3.bf16.msra.mxu0 %v1861_v14  ;;  %v1581_v25 = vld [vmem:[%s2389_s24] ss:$0 sm:$0xff] }
   0xb   :  { %1720 = vmatprep.subr.bf16.mxu0 %v1943_v15 }
   0xe   :  { %69 = vadd.xlane.f32.xlu0 %v68_v3  ;;  %1721 = vmatpush3.bf16.msra.mxu0 %v1862_v16 }
   0xf   :  { %1732 = vmatprep.subr.bf16.mxu0 %v1943_v15 }
  0x97   :  { %v67_v4 = vpop.xlane.xlu0 %66 }
  0x98   :  { %v72_v5 = vmul.f32 0.03125, %v67_v4 }
  0x9a   :  { %v74_v6 = vsub.f32 %v60_v0, %v72_v5 }
  0x9b   :  { %v70_v7 = vpop.xlane.xlu0 %69 }
  0x9c   :  { %v73_v8 = vmul.f32 0.03125, %v70_v7  ;;  %v76_v9 = vmul.f32 %v74_v6, %v74_v6 }
  0x9e   :  { %v75_v10 = vsub.f32 %v61_v1, %v73_v8  ;;  %v78_v11 = vsel %vm64_vm0, %v76_v9, 0.0 }
  0x9f   :  { %79 = vadd.xlane.f32.xlu1 %v78_v11 }
  0xa0   :  { %v77_v12 = vmul.f32 %v75_v10, %v75_v10 }
  0xa2   :  { %v81_v13 = vsel %vm64_vm0, %v77_v12, 0.0 }
  0xa3   :  { %82 = vadd.xlane.f32.xlu1 %v81_v13 }
 0x12c   :  { %v80_v17 = vpop.xlane.xlu1 %79 }
 0x12d   :  { %v84_v18 = vmul.f32 0.03125, %v80_v17 }
 0x12f   :  { %v86_v19 = vadd.f32 1e-12, %v84_v18 }
 0x130   :  { %v83_v20 = vpop.xlane.xlu1 %82 }
 0x131   :  { %1883 = vrsqrt.f32 %v86_v19  ;;  %v85_v21 = vmul.f32 0.03125, %v83_v20 }
 0x133   :  { %v87_v22 = vadd.f32 1e-12, %v85_v21 }
 0x135   :  { %1885 = vrsqrt.f32 %v87_v22 }
 0x13b   :  { %v1884_v23 = vpop.eup %1883 }
 0x13c   :  { %v90_v24 = vmul.f32 %v1884_v23, %v74_v6 }
 0x13e   :  { %v98_v28 = vmul.f32 %v1581_v25, %v90_v24 }
 0x13f   :  { %v1886_v26 = vpop.eup %1885 }
 0x140   :  { %v91_v27 = vmul.f32 %v1886_v26, %v75_v10  ;;  %v2075_v31 = vadd.f32 %v1582_v29, %v98_v28 }
 0x142   :  { %v99_v30 = vmul.f32 %v1581_v25, %v91_v27 }
 0x144   :  { %v2077_v32 = vadd.f32 %v1582_v29, %v99_v30 }
 0x146   :  { %v110_v33 = vpack.c.bf16 %v2077_v32, %v2075_v31 }
 0x148   :  { %1723 = vmatmul.mubr.msk.bf16.vlgmr.msra.gmra.mrb[0].mxu0 %vm64_vm0, %v110_v33 }
 0x149   :  { %1734 = vmatprep.mubr.msk.bf16.mxu0 %vm1944_vm1, %v1943_v15 }
 0x21b   :  { %v171_v35 = vpop.f32.mrb[0].mxu0 }
 0x21c   :  { %v172_v36 = vadd.f32 %v1583_v34, %v171_v35  ;;  %v1724_v37 = vpop.f32.mrb[1].mxu0 }
 0x21d   :  { %v174_v38 = vpop.f32.mrb[2].mxu0 }
 0x21e   :  { %v175_v39 = vadd.f32 %v1583_v34, %v174_v38  ;;  %v1725_v40 = vpop.f32.mrb[3].mxu0  ;;  %v182_v41 = vmul.f32 0.25, %v172_v36 }
 0x220   :  { %v183_v42 = vmul.f32 0.25, %v175_v39  ;;  %v2087_v43 = vpack.c.bf16 %v175_v39, %v172_v36 }
 0x222   :  { %311 = vrot.lane.b32.xlu1 %v2087_v43, %s1945_s3  ;;  %187 = vrot.lane.b32.xlu0 %v2087_v43, %s1946_s29  ;;  %v184_v44 = vpack.c.bf16 %v183_v42, %v182_v41 }
 0x226   :  { %309 = vrot.lane.b32.xlu1 %v184_v44, %s1947_s30 }
 0x294   :  { %v188_v45 = vpop.permute.xlu0 %187  ;;  %v312_v47 = vpop.permute.xlu1 %311 }
 0x295   :  { %v194_v46 = vsel %vm189_vm2, %v188_v45, 0  ;;  %v317_v48 = vsel %vm189_vm2, %v312_v47, 0 }
 0x296   :  { %1727 = vmatpush3.bf16.xpose.msra.mxu1 %v194_v46 }
 0x297   :  { %1738 = vmatprep.subr.bf16.mxu1 %v1943_v15 }
 0x298   :  { %v310_v49 = vpop.permute.xlu1 %309 }
 0x29d   :  { %1729 = vmatmul.mubr.msk.bf16.vlgmr.msra.gmra.mrb[0].mxu1 %vm189_vm2, %v184_v44  ;;  %v1864_v44 = vld [vmem:[%s2369_s6 + $0x8] sm:$0xff]  }
 0x29e   :  { %1739 = vmatpush3.bf16.xpose.msra.mxu1 %v317_v48  ;;  %1740 = vmatprep.mubr.msk.bf16.mxu1 %vm1944_vm1, %v1943_v15 }
 0x29f   :  { %1750 = vmatprep.subr.bf16.mxu1 %v1943_v15 }
 0x2a5   :  { %1741 = vmatmul.mubr.msk.bf16.vlgmr.msra.gmra.mrb[4].mxu1 %vm189_vm2, %v310_v49 }
 0x2a6   :  { %1752 = vmatprep.mubr.msk.bf16.mxu1 %vm1944_vm1, %v1943_v15  ;;  %1751 = vmatpush3.bf16.msra.mxu1 %v1864_v44  ;;  %v1598_v44 = vld [vmem:[%s2375_s11] ss:$0 sm:$0xff] }
 0x2a7   :  { %1762 = vmatprep.subr.bf16.mxu1 %v1943_v15 }
 0x370   :  { %v230_v51 = vpop.f32.mrb[0].mxu1 }
 0x371   :  { %v231_v53 = vadd.f32 %v230_v51, %v2107_v50  ;;  %v1730_v54 = vpop.f32.mrb[1].mxu1 }
 0x372   :  { %v233_v55 = vpop.f32.mrb[2].mxu1 }
 0x373   :  { %v234_v56 = vadd.f32 %v233_v55, %v2112_v52  ;;  %v1731_v57 = vpop.f32.mrb[3].mxu1  ;;  %v237_v58 = vsel %vm189_vm2, %v231_v53, -inf }
 0x374   :  { %238 = vmax.xlane.f32.xlu1 %v237_v58 }
 0x375   :  { %v240_v59 = vsel %vm189_vm2, %v234_v56, -inf }
 0x376   :  { %241 = vmax.xlane.f32.xlu0 %v240_v59 }
 0x378   :  { %v353_v60 = vpop.f32.mrb[4].mxu1 }
 0x379   :  { %v354_v61 = vadd.f32 %v353_v60, %v2107_v50  ;;  %v1742_v62 = vpop.f32.mrb[5].mxu1 }
 0x37a   :  { %v356_v63 = vpop.f32.mrb[6].mxu1  ;;  %v1595_v62 = vld [vmem:[%s2370_s7] ss:$0 sm:$0xff] }
 0x37b   :  { %v357_v0 = vadd.f32 %v356_v63, %v2112_v52  ;;  %v1743_v1 = vpop.f32.mrb[7].mxu1  ;;  %v360_v2 = vsel %vm189_vm2, %v354_v61, -inf }
 0x37c   :  { %361 = vmax.xlane.f32.xlu0 %v360_v2 }
 0x37d   :  { %v363_v3 = vsel %vm189_vm2, %v357_v0, -inf }
 0x380   :  { %364 = vmax.xlane.f32.xlu0 %v363_v3 }
 0x401   :  { %v239_v4 = vpop.xlane.xlu1 %238 }
 0x402   :  { %v243_v5 = vsub.f32 %v231_v53, %v239_v4 }
 0x403   :  { %v242_v6 = vpop.xlane.xlu0 %241 }
 0x404   :  { %v245_v7 = vmul.f32 1.442695, %v243_v5  ;;  %v244_v8 = vsub.f32 %v234_v56, %v242_v6 }
 0x406   :  { %1887 = vpow2.f32 %v245_v7  ;;  %v247_v9 = vmul.f32 1.442695, %v244_v8 }
 0x408   :  { %1889 = vpow2.f32 %v247_v9 }
 0x409   :  { %v362_v10 = vpop.xlane.xlu0 %361 }
 0x40a   :  { %v366_v11 = vsub.f32 %v354_v61, %v362_v10 }
 0x40c   :  { %v368_v12 = vmul.f32 1.442695, %v366_v11 }
 0x40d   :  { %v365_v13 = vpop.xlane.xlu0 %364 }
 0x40e   :  { %1891 = vpow2.f32 %v368_v12  ;;  %v367_v14 = vsub.f32 %v357_v0, %v365_v13 }
 0x410   :  { %v1888_v16 = vpop.eup %1887  ;;  %v370_v17 = vmul.f32 1.442695, %v367_v14 }
 0x411   :  { %v249_v18 = vsel %vm189_vm2, %v1888_v16, 0.0 }
 0x412   :  { %v1890_v19 = vpop.eup %1889  ;;  %1893 = vpow2.f32 %v370_v17  ;;  %250 = vadd.xlane.f32.xlu1 %v249_v18 }
 0x413   :  { %v252_v20 = vsel %vm189_vm2, %v1890_v19, 0.0 }
 0x414   :  { %253 = vadd.xlane.f32.xlu0 %v252_v20  ;;  %v1866_v20 = vld [vmem:[%s2371_s10 + $0x8] sm:$0xff]  }
 0x418   :  { %v1892_v21 = vpop.eup %1891 }
 0x419   :  { %v372_v22 = vsel %vm189_vm2, %v1892_v21, 0.0 }
 0x41a   :  { %373 = vadd.xlane.f32.xlu1 %v372_v22 }
 0x41c   :  { %v1894_v23 = vpop.eup %1893 }
 0x41d   :  { %v375_v24 = vsel %vm189_vm2, %v1894_v23, 0.0 }
 0x41e   :  { %376 = vadd.xlane.f32.xlu0 %v375_v24 }
 0x42b   :  { %260 = vrot.lane.b32.xlu1 %v2087_v43, %s1948_s1 }
 0x434   :  { %383 = vrot.lane.b32.xlu0 %v2087_v43, %s1949_s22  ;;  %v1863_v43 = vld [vmem:[%s2369_s6] sm:$0xff]  }
 0x49f   :  { %v251_v25 = vpop.xlane.xlu1 %250 }
 0x4a0   :  { %1895 = vrcp.f32 %v251_v25 }
 0x4a1   :  { %v254_v26 = vpop.xlane.xlu0 %253 }
 0x4a2   :  { %1897 = vrcp.f32 %v254_v26 }
 0x4a7   :  { %v374_v27 = vpop.xlane.xlu1 %373 }
 0x4a8   :  { %1899 = vrcp.f32 %v374_v27 }
 0x4aa   :  { %v1896_v28 = vpop.eup %1895 }
 0x4ab   :  { %v261_v29 = vpop.permute.xlu1 %260  ;;  %v377_v30 = vpop.xlane.xlu0 %376  ;;  %v257_v34 = vmul.f32 %v1896_v28, %v1888_v16  ;;  %v1596_v28 = vld [vmem:[%s2372_s8] ss:$0 sm:$0xff] }
 0x4ac   :  { %v1898_v33 = vpop.eup %1897  ;;  %1901 = vrcp.f32 %v377_v30  ;;  %1733 = vmatpush3.bf16.msra.mxu0 %v261_v29 }
 0x4ad   :  { %v258_v35 = vmul.f32 %v1898_v33, %v1890_v19  ;;  %1744 = vmatprep.subr.bf16.mxu0 %v1943_v15 }
 0x4af   :  { %v384_v36 = vpop.permute.xlu0 %383  ;;  %v259_v37 = vpack.c.bf16 %v258_v35, %v257_v34  ;;  %v1597_v35 = vld [vmem:[%s2373_s9] ss:$0 sm:$0xff] }
 0x4b1   :  { %1735 = vmatmul.mubr.msk.bf16.vlgmr.msra.gmra.mrb[4].mxu0 %vm189_vm2, %v259_v37 }
 0x4b2   :  { %1745 = vmatpush3.bf16.msra.mxu0 %v384_v36  ;;  %1746 = vmatprep.mubr.msk.bf16.mxu0 %vm1944_vm1, %v1943_v15  ;;  %v1900_v38 = vpop.eup %1899 }
 0x4b3   :  { %1756 = vmatprep.subr.bf16.mxu0 %v1943_v15  ;;  %v380_v40 = vmul.f32 %v1900_v38, %v1892_v21 }
 0x4b6   :  { %v1902_v39 = vpop.eup %1901 }
 0x4b7   :  { %v381_v41 = vmul.f32 %v1902_v39, %v1894_v23 }
 0x4b9   :  { %v382_v42 = vpack.c.bf16 %v381_v41, %v380_v40  ;;  %v1867_v40 = vld [vmem:[%s2374_s12] sm:$0xff]   ;;  %v1868_v41 = vld [vmem:[%s2374_s12 + $0x8] sm:$0xff]  }
 0x4bb   :  { %1747 = vmatmul.mubr.msk.bf16.vlgmr.msra.gmra.mrb[8].mxu0 %vm189_vm2, %v382_v42  ;;  %v1869_v42 = vld [vmem:[%s2374_s12 + $0x10] sm:$0xff]  }
 0x4bc   :  { %1758 = vmatprep.mubr.msk.bf16.mxu0 %vm1944_vm1, %v1943_v15  ;;  %1757 = vmatpush3.bf16.msra.mxu0 %v1863_v43  ;;  %v1870_v43 = vld [vmem:[%s2374_s12 + $0x18] sm:$0xff]  }
 0x4bd   :  { %1770 = vmatprep.subr.bf16.mxu0 %v1943_v15 }
 0x584   :  { %v300_v45 = vpop.f32.mrb[4].mxu0 }
 0x585   :  { %v1736_v46 = vpop.f32.mrb[5].mxu0 }
 0x586   :  { %v303_v47 = vpop.f32.mrb[6].mxu0 }
 0x587   :  { %v307_v48 = vpack.c.bf16 %v303_v47, %v300_v45  ;;  %v1737_v49 = vpop.f32.mrb[7].mxu0 }
 0x589   :  { %1759 = vmatmul.mubr.msk.bf16.vlgmr.msra.gmra.mrb[12].mxu0 %vm189_vm2, %v307_v48 }
 0x58a   :  { %1778 = vmatprep.mubr.msk.bf16.mxu0 %vm1944_vm1, %v1943_v15  ;;  %1771 = vmatpush3.bf16.msra.mxu0 %v1867_v40 }
 0x58b   :  { %1772 = vmatprep.subr.bf16.mxu0 %v1943_v15 }
 0x58e   :  { %v423_v51 = vpop.f32.mrb[8].mxu0  ;;  %1773 = vmatpush3.bf16.msra.mxu0 %v1868_v41 }
 0x58f   :  { %v1748_v53 = vpop.f32.mrb[9].mxu0  ;;  %1774 = vmatprep.subr.bf16.mxu0 %v1943_v15 }
 0x590   :  { %v426_v54 = vpop.f32.mrb[10].mxu0 }
 0x591   :  { %v430_v55 = vpack.c.bf16 %v426_v54, %v423_v51  ;;  %v1749_v56 = vpop.f32.mrb[11].mxu0 }
 0x592   :  { %1775 = vmatpush3.bf16.msra.mxu0 %v1869_v42 }
 0x593   :  { %1753 = vmatmul.mubr.msk.bf16.vlgmr.msra.gmra.mrb[8].mxu1 %vm189_vm2, %v430_v55  ;;  %1776 = vmatprep.subr.bf16.mxu0 %v1943_v15 }
 0x594   :  { %1766 = vmatprep.mubr.msk.bf16.mxu1 %vm1944_vm1, %v1943_v15 }
 0x596   :  { %1777 = vmatpush3.bf16.msra.mxu0 %v1870_v43 }
 0x597   :  { %1796 = vmatprep.subr.bf16.mxu0 %v1943_v15 }
 0x65c   :  { %v524_v57 = vpop.f32.mrb[12].mxu0 }
 0x65d   :  { %v1760_v58 = vpop.f32.mrb[13].mxu0 }
 0x65e   :  { %v527_v59 = vpop.f32.mrb[14].mxu0 }
 0x65f   :  { %v1761_v60 = vpop.f32.mrb[15].mxu0 }
 0x666   :  { %v474_v61 = vpop.f32.mrb[8].mxu1 }
 0x667   :  { %v525_v63 = vadd.f32 %v524_v57, %v474_v61  ;;  %v1754_v0 = vpop.f32.mrb[9].mxu1 }
 0x668   :  { %v477_v1 = vpop.f32.mrb[10].mxu1 }
 0x669   :  { %v538_v2 = vadd.f32 %v1595_v62, %v525_v63  ;;  %v528_v3 = vadd.f32 %v527_v59, %v477_v1  ;;  %v1755_v4 = vpop.f32.mrb[11].mxu1 }
 0x66b   :  { %v539_v5 = vadd.f32 %v1595_v62, %v528_v3  ;;  %v540_v6 = vadd.f32 %v538_v2, %v2075_v31 }
 0x66d   :  { %v544_v7 = vsel %vm64_vm0, %v540_v6, 0.0  ;;  %v541_v8 = vadd.f32 %v539_v5, %v2077_v32  ;;  %v1865_v32 = vld [vmem:[%s2371_s10] sm:$0xff]  }
 0x66e   :  { %545 = vadd.xlane.f32.xlu1 %v544_v7  ;;  %1763 = vmatpush3.bf16.msra.mxu1 %v1865_v32 }
 0x66f   :  { %v547_v9 = vsel %vm64_vm0, %v541_v8, 0.0  ;;  %1764 = vmatprep.subr.bf16.mxu1 %v1943_v15 }
 0x670   :  { %548 = vadd.xlane.f32.xlu0 %v547_v9 }
 0x672   :  { %1765 = vmatpush3.bf16.msra.mxu1 %v1866_v20 }
 0x673   :  { %1782 = vmatprep.subr.bf16.mxu1 %v1943_v15 }
 0x6fb   :  { %v546_v10 = vpop.xlane.xlu1 %545 }
 0x6fc   :  { %v550_v11 = vmul.f32 0.03125, %v546_v10 }
 0x6fd   :  { %v549_v12 = vpop.xlane.xlu0 %548 }
 0x6fe   :  { %v552_v13 = vsub.f32 %v540_v6, %v550_v11  ;;  %v551_v14 = vmul.f32 0.03125, %v549_v12 }
 0x700   :  { %v553_v16 = vsub.f32 %v541_v8, %v551_v14  ;;  %v554_v17 = vmul.f32 %v552_v13, %v552_v13  ;;  %v1602_v8 = vld [vmem:[%s2376_s13] ss:$0 sm:$0xff] }
 0x702   :  { %v556_v18 = vsel %vm64_vm0, %v554_v17, 0.0  ;;  %v555_v19 = vmul.f32 %v553_v16, %v553_v16 }
 0x703   :  { %557 = vadd.xlane.f32.xlu1 %v556_v18 }
 0x704   :  { %v559_v31 = vsel %vm64_vm0, %v555_v19, 0.0 }
 0x705   :  { %560 = vadd.xlane.f32.xlu0 %v559_v31 }
 0x790   :  { %v558_v21 = vpop.xlane.xlu1 %557 }
 0x791   :  { %v562_v22 = vmul.f32 0.03125, %v558_v21 }
 0x792   :  { %v561_v23 = vpop.xlane.xlu0 %560 }
 0x793   :  { %v564_v24 = vadd.f32 1e-12, %v562_v22  ;;  %v563_v25 = vmul.f32 0.03125, %v561_v23 }
 0x795   :  { %1903 = vrsqrt.f32 %v564_v24  ;;  %v565_v26 = vadd.f32 1e-12, %v563_v25 }
 0x797   :  { %1905 = vrsqrt.f32 %v565_v26 }
 0x79f   :  { %v1904_v27 = vpop.eup %1903 }
 0x7a0   :  { %v568_v29 = vmul.f32 %v1904_v27, %v552_v13 }
 0x7a1   :  { %v1906_v30 = vpop.eup %1905 }
 0x7a2   :  { %v576_v33 = vmul.f32 %v1596_v28, %v568_v29  ;;  %v569_v34 = vmul.f32 %v1906_v30, %v553_v16  ;;  %v1872_v29 = vld [vmem:[%s2388_s20 + $0x18] sm:$0xff]  }
 0x7a4   :  { %v577_v36 = vmul.f32 %v1596_v28, %v569_v34  ;;  %v584_v37 = vadd.f32 %v1597_v35, %v576_v33  ;;  %v1871_v28 = vld [vmem:[%s2388_s20 + $0x10] sm:$0xff]  }
 0x7a6   :  { %v585_v38 = vadd.f32 %v1597_v35, %v577_v36 }
 0x7a8   :  { %v586_v39 = vpack.c.bf16 %v585_v38, %v584_v37 }
 0x7aa   :  { %1767 = vmatmul.mubr.msk.bf16.vlgmr.msra.gmra.mrb[12].mxu1 %vm64_vm0, %v586_v39  ;;  %v1608_v39 = vld [vmem:[%s2377_s14] ss:$0 sm:$0xff] }
 0x7ab   :  { %1786 = vmatprep.mubr.msk.bf16.mxu1 %vm1944_vm1, %v1943_v15  ;;  %1783 = vmatpush3.bf16.msra.mxu1 %v1871_v28 }
 0x7ac   :  { %1784 = vmatprep.subr.bf16.mxu1 %v1943_v15 }
 0x7af   :  { %1785 = vmatpush3.bf16.msra.mxu1 %v1872_v29 }
 0x7b0   :  { %1790 = vmatprep.subr.bf16.mxu1 %v1943_v15 }
 0x87d   :  { %v647_v45 = vpop.f32.mrb[12].mxu1 }
 0x87e   :  { %v648_v46 = vadd.f32 %v1598_v44, %v647_v45  ;;  %v1768_v47 = vpop.f32.mrb[13].mxu1 }
 0x87f   :  { %v650_v48 = vpop.f32.mrb[14].mxu1 }
 0x880   :  { %v656_v49 = vmul.f32 0.044715, %v648_v46  ;;  %v651_v51 = vadd.f32 %v1598_v44, %v650_v48  ;;  %v1769_v53 = vpop.f32.mrb[15].mxu1  ;;  %v654_v2 = vmul.f32 0.5, %v648_v46  ;;  %v1609_v44 = vld [vmem:[%s2378_s15] ss:$0 sm:$0xff] }
 0x882   :  { %v658_v54 = vmul.f32 %v656_v49, %v648_v46  ;;  %v657_v55 = vmul.f32 0.044715, %v651_v51  ;;  %v655_v3 = vmul.f32 0.5, %v651_v51  ;;  %v1615_v49 = vld [vmem:[%s2367_s5 + $0x1] ss:$0 sm:$0xff] }
 0x884   :  { %v660_v56 = vmul.f32 %v658_v54, %v648_v46  ;;  %v659_v57 = vmul.f32 %v657_v55, %v651_v51 }
 0x886   :  { %v662_v58 = vadd.f32 %v660_v56, %v648_v46  ;;  %v661_v59 = vmul.f32 %v659_v57, %v651_v51 }
 0x888   :  { %v664_v60 = vmul.f32 0.7978846, %v662_v58  ;;  %v663_v61 = vadd.f32 %v661_v59, %v651_v51 }
 0x88a   :  { %1907 = vtanh.f32 %v664_v60  ;;  %v665_v62 = vmul.f32 0.7978846, %v663_v61 }
 0x88c   :  { %1909 = vtanh.f32 %v665_v62 }
 0x894   :  { %v1908_v63 = vpop.eup %1907 }
 0x895   :  { %v668_v0 = vadd.f32 1.0, %v1908_v63 }
 0x896   :  { %v1910_v1 = vpop.eup %1909 }
 0x897   :  { %v669_v4 = vadd.f32 1.0, %v1910_v1  ;;  %v670_v5 = vmul.f32 %v668_v0, %v654_v2 }
 0x899   :  { %v671_v6 = vmul.f32 %v669_v4, %v655_v3 }
 0x89b   :  { %v672_v7 = vpack.c.bf16 %v671_v6, %v670_v5 }
 0x89d   :  { %1779 = vmatmul.mubr.msk.bf16.vlgmr.msra.gmra.mrb[16].mxu0 %vm712_vm3, %v672_v7 }
 0x89e   :  { %1798 = vmatprep.mubr.msk.bf16.mxu0 %vm1944_vm1, %v1943_v15 }
 0x970   :  { %v750_v9 = vpop.f32.mrb[16].mxu0 }
 0x971   :  { %v751_v10 = vadd.f32 %v1602_v8, %v750_v9  ;;  %v1780_v11 = vpop.f32.mrb[17].mxu0 }
 0x972   :  { %v753_v12 = vpop.f32.mrb[18].mxu0 }
 0x973   :  { %v754_v13 = vadd.f32 %v1602_v8, %v753_v12  ;;  %v1781_v14 = vpop.f32.mrb[19].mxu0  ;;  %v757_v16 = vadd.f32 %v751_v10, %v584_v37 }
 0x975   :  { %v761_v17 = vsel %vm64_vm0, %v757_v16, 0.0  ;;  %v758_v18 = vadd.f32 %v754_v13, %v585_v38 }
 0x976   :  { %762 = vadd.xlane.f32.xlu1 %v761_v17 }
 0x977   :  { %v764_v19 = vsel %vm64_vm0, %v758_v18, 0.0 }
 0x978   :  { %765 = vadd.xlane.f32.xlu0 %v764_v19 }
 0xa03   :  { %v763_v31 = vpop.xlane.xlu1 %762 }
 0xa04   :  { %v767_v32 = vmul.f32 0.03125, %v763_v31 }
 0xa05   :  { %v766_v20 = vpop.xlane.xlu0 %765 }
 0xa06   :  { %v769_v21 = vsub.f32 %v757_v16, %v767_v32  ;;  %v768_v22 = vmul.f32 0.03125, %v766_v20 }
 0xa08   :  { %v770_v23 = vsub.f32 %v758_v18, %v768_v22  ;;  %v771_v24 = vmul.f32 %v769_v21, %v769_v21 }
 0xa0a   :  { %v773_v25 = vsel %vm64_vm0, %v771_v24, 0.0  ;;  %v772_v26 = vmul.f32 %v770_v23, %v770_v23 }
 0xa0b   :  { %774 = vadd.xlane.f32.xlu1 %v773_v25 }
 0xa0c   :  { %v776_v27 = vsel %vm64_vm0, %v772_v26, 0.0 }
 0xa0d   :  { %777 = vadd.xlane.f32.xlu0 %v776_v27 }
 0xa98   :  { %v775_v30 = vpop.xlane.xlu1 %774 }
 0xa99   :  { %v779_v33 = vmul.f32 0.03125, %v775_v30 }
 0xa9a   :  { %v778_v34 = vpop.xlane.xlu0 %777 }
 0xa9b   :  { %v781_v35 = vadd.f32 1e-12, %v779_v33  ;;  %v780_v36 = vmul.f32 0.03125, %v778_v34 }
 0xa9d   :  { %1911 = vrsqrt.f32 %v781_v35  ;;  %v782_v37 = vadd.f32 1e-12, %v780_v36 }
 0xa9f   :  { %1913 = vrsqrt.f32 %v782_v37 }
 0xaa7   :  { %v1912_v38 = vpop.eup %1911 }
 0xaa8   :  { %v785_v40 = vmul.f32 %v1912_v38, %v769_v21 }
 0xaa9   :  { %v1914_v41 = vpop.eup %1913 }
 0xaaa   :  { %v793_v42 = vmul.f32 %v1608_v39, %v785_v40  ;;  %v786_v43 = vmul.f32 %v1914_v41, %v770_v23 }
 0xaac   :  { %v794_v45 = vmul.f32 %v1608_v39, %v786_v43  ;;  %v2221_v46 = vadd.f32 %v1609_v44, %v793_v42 }
 0xaae   :  { %v2223_v47 = vadd.f32 %v1609_v44, %v794_v45 }
 0xab0   :  { %v803_v48 = vpack.c.bf16 %v2223_v47, %v2221_v46 }
 0xab2   :  { %1787 = vmatmul.mubr.msk.bf16.vlgmr.msra.gmra.mrb[16].mxu1 %vm64_vm0, %v803_v48 }
 0xab3   :  { %1792 = vmatprep.mubr.msk.bf16.mxu1 %vm1944_vm1, %v1943_v15 }
 0xb85   :  { %v866_v51 = vpop.f32.mrb[16].mxu1 }
 0xb86   :  { %v867_v53 = vadd.f32 %v1615_v49, %v866_v51  ;;  %v1788_v54 = vpop.f32.mrb[17].mxu1 }
 0xb87   :  { %v869_v55 = vpop.f32.mrb[18].mxu1 }
 0xb88   :  { %v870_v56 = vadd.f32 %v1615_v49, %v869_v55  ;;  %v1789_v57 = vpop.f32.mrb[19].mxu1  ;;  %v878_v58 = vmul.f32 0.25, %v867_v53 }
 0xb8a   :  { %v879_v59 = vmul.f32 0.25, %v870_v56  ;;  %v2233_v60 = vpack.c.bf16 %v870_v56, %v867_v53 }
 0xb8c   :  { %1006 = vrot.lane.b32.xlu0 %v2233_v60, %s1945_s3  ;;  %883 = vrot.lane.b32.xlu1 %v2233_v60, %s1946_s29  ;;  %v880_v61 = vpack.c.bf16 %v879_v59, %v878_v58  ;;  %v1873_v58 = vld [vmem:[%s2369_s6 + $0x10] sm:$0xff]   ;;  %v1874_v59 = vld [vmem:[%s2369_s6 + $0x18] sm:$0xff]  }
 0xb90   :  { %1004 = vrot.lane.b32.xlu1 %v880_v61, %s1947_s30 }
 0xbfe   :  { %v884_v62 = vpop.permute.xlu1 %883  ;;  %v1007_v0 = vpop.permute.xlu0 %1006 }
 0xbff   :  { %v889_v63 = vsel %vm189_vm2, %v884_v62, 0  ;;  %v1012_v1 = vsel %vm189_vm2, %v1007_v0, 0 }
 0xc00   :  { %1791 = vmatpush3.bf16.xpose.msra.mxu1 %v889_v63 }
 0xc01   :  { %1802 = vmatprep.subr.bf16.mxu1 %v1943_v15 }
 0xc02   :  { %v1005_v2 = vpop.permute.xlu1 %1004 }
 0xc07   :  { %1793 = vmatmul.mubr.msk.bf16.vlgmr.msra.gmra.mrb[20].mxu1 %vm189_vm2, %v880_v61 }
 0xc08   :  { %1803 = vmatpush3.bf16.xpose.msra.mxu1 %v1012_v1  ;;  %1804 = vmatprep.mubr.msk.bf16.mxu1 %vm1944_vm1, %v1943_v15 }
 0xc09   :  { %1814 = vmatprep.subr.bf16.mxu1 %v1943_v15 }
 0xc0f   :  { %1805 = vmatmul.mubr.msk.bf16.vlgmr.msra.gmra.mrb[24].mxu1 %vm189_vm2, %v1005_v2 }
 0xc10   :  { %1816 = vmatprep.mubr.msk.bf16.mxu1 %vm1944_vm1, %v1943_v15  ;;  %1815 = vmatpush3.bf16.msra.mxu1 %v1874_v59 }
 0xc11   :  { %1826 = vmatprep.subr.bf16.mxu1 %v1943_v15 }
 0xcda   :  { %v925_v3 = vpop.f32.mrb[20].mxu1 }
 0xcdb   :  { %v926_v4 = vadd.f32 %v925_v3, %v2107_v50  ;;  %v1794_v5 = vpop.f32.mrb[21].mxu1 }
 0xcdc   :  { %v928_v6 = vpop.f32.mrb[22].mxu1 }
 0xcdd   :  { %v929_v7 = vadd.f32 %v928_v6, %v2112_v52  ;;  %v1795_v8 = vpop.f32.mrb[23].mxu1  ;;  %v932_v9 = vsel %vm189_vm2, %v926_v4, -inf }
 0xcde   :  { %933 = vmax.xlane.f32.xlu1 %v932_v9 }
 0xcdf   :  { %v935_v10 = vsel %vm189_vm2, %v929_v7, -inf }
 0xce0   :  { %936 = vmax.xlane.f32.xlu0 %v935_v10 }
 0xce2   :  { %v1048_v11 = vpop.f32.mrb[24].mxu1 }
 0xce3   :  { %v1049_v12 = vadd.f32 %v1048_v11, %v2107_v50  ;;  %v1806_v13 = vpop.f32.mrb[25].mxu1  ;;  %v1632_v11 = vld [vmem:[%s2370_s7 + $0x1] ss:$0 sm:$0xff] }
 0xce4   :  { %v1051_v14 = vpop.f32.mrb[26].mxu1 }
 0xce5   :  { %v1052_v16 = vadd.f32 %v1051_v14, %v2112_v52  ;;  %v1807_v17 = vpop.f32.mrb[27].mxu1  ;;  %v1055_v18 = vsel %vm189_vm2, %v1049_v12, -inf }
 0xce6   :  { %1056 = vmax.xlane.f32.xlu0 %v1055_v18 }
 0xce7   :  { %v1058_v19 = vsel %vm189_vm2, %v1052_v16, -inf }
 0xce8   :  { %1059 = vmax.xlane.f32.xlu1 %v1058_v19 }
 0xd6b   :  { %v934_v31 = vpop.xlane.xlu1 %933 }
 0xd6c   :  { %v938_v32 = vsub.f32 %v926_v4, %v934_v31 }
 0xd6d   :  { %v937_v20 = vpop.xlane.xlu0 %936 }
 0xd6e   :  { %v940_v21 = vmul.f32 1.442695, %v938_v32  ;;  %v939_v22 = vsub.f32 %v929_v7, %v937_v20 }
 0xd70   :  { %1915 = vpow2.f32 %v940_v21  ;;  %v942_v23 = vmul.f32 1.442695, %v939_v22 }
 0xd72   :  { %1917 = vpow2.f32 %v942_v23 }
 0xd73   :  { %v1057_v50 = vpop.xlane.xlu0 %1056 }
 0xd74   :  { %v1061_v24 = vsub.f32 %v1049_v12, %v1057_v50 }
 0xd75   :  { %v1060_v25 = vpop.xlane.xlu1 %1059 }
 0xd76   :  { %v1063_v26 = vmul.f32 1.442695, %v1061_v24  ;;  %v1062_v52 = vsub.f32 %v1052_v16, %v1060_v25 }
 0xd78   :  { %1919 = vpow2.f32 %v1063_v26  ;;  %v1065_v27 = vmul.f32 1.442695, %v1062_v52 }
 0xd7a   :  { %v1916_v28 = vpop.eup %1915  ;;  %1921 = vpow2.f32 %v1065_v27 }
 0xd7b   :  { %v944_v29 = vsel %vm189_vm2, %v1916_v28, 0.0 }
 0xd7c   :  { %v1918_v30 = vpop.eup %1917  ;;  %945 = vadd.xlane.f32.xlu0 %v944_v29  ;;  %v1876_v29 = vld [vmem:[%s2371_s10 + $0x18] sm:$0xff]  }
 0xd7d   :  { %v947_v33 = vsel %vm189_vm2, %v1918_v30, 0.0 }
 0xd7e   :  { %948 = vadd.xlane.f32.xlu1 %v947_v33 }
 0xd82   :  { %v1920_v34 = vpop.eup %1919 }
 0xd83   :  { %v1067_v35 = vsel %vm189_vm2, %v1920_v34, 0.0 }
 0xd84   :  { %v1922_v36 = vpop.eup %1921  ;;  %1068 = vadd.xlane.f32.xlu0 %v1067_v35 }
 0xd85   :  { %v1070_v37 = vsel %vm189_vm2, %v1922_v36, 0.0 }
 0xd86   :  { %1071 = vadd.xlane.f32.xlu1 %v1070_v37 }
 0xd97   :  { %1078 = vrot.lane.b32.xlu1 %v2233_v60, %s1949_s22 }
 0xd9a   :  { %955 = vrot.lane.b32.xlu0 %v2233_v60, %s1948_s1 }
 0xe09   :  { %v946_v38 = vpop.xlane.xlu0 %945 }
 0xe0a   :  { %1923 = vrcp.f32 %v946_v38 }
 0xe0b   :  { %v949_v39 = vpop.xlane.xlu1 %948 }
 0xe0c   :  { %1925 = vrcp.f32 %v949_v39  ;;  %v1635_v39 = vld [vmem:[%s2372_s8 + $0x1] ss:$0 sm:$0xff] }
 0xe11   :  { %v1069_v40 = vpop.xlane.xlu0 %1068 }
 0xe12   :  { %1927 = vrcp.f32 %v1069_v40 }
 0xe13   :  { %v1072_v41 = vpop.xlane.xlu1 %1071 }
 0xe14   :  { %v1924_v42 = vpop.eup %1923  ;;  %1929 = vrcp.f32 %v1072_v41 }
 0xe15   :  { %v956_v43 = vpop.permute.xlu0 %955  ;;  %v952_v45 = vmul.f32 %v1924_v42, %v1916_v28 }
 0xe16   :  { %v1926_v44 = vpop.eup %1925  ;;  %1797 = vmatpush3.bf16.msra.mxu0 %v956_v43 }
 0xe17   :  { %v953_v48 = vmul.f32 %v1926_v44, %v1918_v30  ;;  %1808 = vmatprep.subr.bf16.mxu0 %v1943_v15  ;;  %v1079_v51 = vpop.permute.xlu1 %1078  ;;  %v1636_v44 = vld [vmem:[%s2373_s9 + $0x1] ss:$0 sm:$0xff] }
 0xe19   :  { %v954_v49 = vpack.c.bf16 %v953_v48, %v952_v45 }
 0xe1b   :  { %1799 = vmatmul.mubr.msk.bf16.vlgmr.msra.gmra.mrb[20].mxu0 %vm189_vm2, %v954_v49 }
 0xe1c   :  { %v1928_v53 = vpop.eup %1927  ;;  %1809 = vmatpush3.bf16.msra.mxu0 %v1079_v51  ;;  %1810 = vmatprep.mubr.msk.bf16.mxu0 %vm1944_vm1, %v1943_v15 }
 0xe1d   :  { %1820 = vmatprep.subr.bf16.mxu0 %v1943_v15  ;;  %v1075_v55 = vmul.f32 %v1928_v53, %v1920_v34  ;;  %v1877_v53 = vld [vmem:[%s2374_s12 + $0x20] sm:$0xff]  }
 0xe1e   :  { %v1930_v54 = vpop.eup %1929 }
 0xe1f   :  { %v1076_v56 = vmul.f32 %v1930_v54, %v1922_v36  ;;  %v1878_v54 = vld [vmem:[%s2374_s12 + $0x28] sm:$0xff]  }
 0xe21   :  { %v1077_v57 = vpack.c.bf16 %v1076_v56, %v1075_v55  ;;  %v1879_v55 = vld [vmem:[%s2374_s12 + $0x30] sm:$0xff]   ;;  %v1880_v56 = vld [vmem:[%s2374_s12 + $0x38] sm:$0xff]  }
 0xe23   :  { %1811 = vmatmul.mubr.msk.bf16.vlgmr.msra.gmra.mrb[24].mxu0 %vm189_vm2, %v1077_v57  ;;  %v1642_v57 = vld [vmem:[%s2375_s11 + $0x1] ss:$0 sm:$0xff] }
 0xe24   :  { %1822 = vmatprep.mubr.msk.bf16.mxu0 %vm1944_vm1, %v1943_v15  ;;  %1821 = vmatpush3.bf16.msra.mxu0 %v1873_v58 }
 0xe25   :  { %1834 = vmatprep.subr.bf16.mxu0 %v1943_v15 }
 0xeee   :  { %v995_v60 = vpop.f32.mrb[20].mxu0 }
 0xeef   :  { %v1800_v61 = vpop.f32.mrb[21].mxu0 }
 0xef0   :  { %v998_v62 = vpop.f32.mrb[22].mxu0 }
 0xef1   :  { %v1002_v63 = vpack.c.bf16 %v998_v62, %v995_v60  ;;  %v1801_v0 = vpop.f32.mrb[23].mxu0 }
 0xef3   :  { %1823 = vmatmul.mubr.msk.bf16.vlgmr.msra.gmra.mrb[28].mxu0 %vm189_vm2, %v1002_v63 }
 0xef4   :  { %1842 = vmatprep.mubr.msk.bf16.mxu0 %vm1944_vm1, %v1943_v15  ;;  %1835 = vmatpush3.bf16.msra.mxu0 %v1877_v53 }
 0xef5   :  { %1836 = vmatprep.subr.bf16.mxu0 %v1943_v15 }
 0xef6   :  { %v1118_v1 = vpop.f32.mrb[24].mxu0 }
 0xef7   :  { %v1812_v2 = vpop.f32.mrb[25].mxu0 }
 0xef8   :  { %v1121_v3 = vpop.f32.mrb[26].mxu0  ;;  %1837 = vmatpush3.bf16.msra.mxu0 %v1878_v54 }
 0xef9   :  { %v1125_v4 = vpack.c.bf16 %v1121_v3, %v1118_v1  ;;  %v1813_v5 = vpop.f32.mrb[27].mxu0  ;;  %1838 = vmatprep.subr.bf16.mxu0 %v1943_v15 }
 0xefb   :  { %1817 = vmatmul.mubr.msk.bf16.vlgmr.msra.gmra.mrb[28].mxu1 %vm189_vm2, %v1125_v4 }
 0xefc   :  { %1830 = vmatprep.mubr.msk.bf16.mxu1 %vm1944_vm1, %v1943_v15  ;;  %1839 = vmatpush3.bf16.msra.mxu0 %v1879_v55 }
 0xefd   :  { %1840 = vmatprep.subr.bf16.mxu0 %v1943_v15 }
 0xf00   :  { %1841 = vmatpush3.bf16.msra.mxu0 %v1880_v56 }
 0xfc6   :  { %v1219_v6 = vpop.f32.mrb[28].mxu0 }
 0xfc7   :  { %v1824_v7 = vpop.f32.mrb[29].mxu0 }
 0xfc8   :  { %v1222_v8 = vpop.f32.mrb[30].mxu0 }
 0xfc9   :  { %v1825_v9 = vpop.f32.mrb[31].mxu0 }
 0xfce   :  { %v1169_v10 = vpop.f32.mrb[28].mxu1 }
 0xfcf   :  { %v1220_v12 = vadd.f32 %v1219_v6, %v1169_v10  ;;  %v1818_v13 = vpop.f32.mrb[29].mxu1 }
 0xfd0   :  { %v1172_v14 = vpop.f32.mrb[30].mxu1 }
 0xfd1   :  { %v1234_v16 = vadd.f32 %v1632_v11, %v1220_v12  ;;  %v1223_v17 = vadd.f32 %v1222_v8, %v1172_v14  ;;  %v1819_v18 = vpop.f32.mrb[31].mxu1 }
 0xfd3   :  { %v1235_v19 = vadd.f32 %v1632_v11, %v1223_v17  ;;  %v1236_v31 = vadd.f32 %v1234_v16, %v2221_v46 }
 0xfd5   :  { %v1242_v32 = vsel %vm64_vm0, %v1236_v31, 0.0  ;;  %v1237_v20 = vadd.f32 %v1235_v19, %v2223_v47  ;;  %v1875_v47 = vld [vmem:[%s2371_s10 + $0x10] sm:$0xff]  }
 0xfd6   :  { %1243 = vadd.xlane.f32.xlu1 %v1242_v32  ;;  %1827 = vmatpush3.bf16.msra.mxu1 %v1875_v47 }
 0xfd7   :  { %v1245_v21 = vsel %vm64_vm0, %v1237_v20, 0.0  ;;  %1828 = vmatprep.subr.bf16.mxu1 %v1943_v15 }
 0xfd8   :  { %1246 = vadd.xlane.f32.xlu0 %v1245_v21 }
 0xfda   :  { %1829 = vmatpush3.bf16.msra.mxu1 %v1876_v29 }
 0xfdb   :  { %1846 = vmatprep.subr.bf16.mxu1 %v1943_v15 }
0x1063   :  { %v1244_v22 = vpop.xlane.xlu1 %1243 }
0x1064   :  { %v1248_v23 = vmul.f32 0.03125, %v1244_v22 }
0x1065   :  { %v1247_v50 = vpop.xlane.xlu0 %1246 }
0x1066   :  { %v1250_v24 = vsub.f32 %v1236_v31, %v1248_v23  ;;  %v1249_v25 = vmul.f32 0.03125, %v1247_v50  ;;  %v1655_v31 = vld [vmem:[%s2376_s13 + $0x1] ss:$0 sm:$0xff] }
0x1068   :  { %v1251_v26 = vsub.f32 %v1237_v20, %v1249_v25  ;;  %v1252_v52 = vmul.f32 %v1250_v24, %v1250_v24 }
0x106a   :  { %v1254_v27 = vsel %vm64_vm0, %v1252_v52, 0.0  ;;  %v1253_v28 = vmul.f32 %v1251_v26, %v1251_v26 }
0x106b   :  { %1255 = vadd.xlane.f32.xlu0 %v1254_v27 }
0x106c   :  { %v1257_v46 = vsel %vm64_vm0, %v1253_v28, 0.0 }
0x106d   :  { %1258 = vadd.xlane.f32.xlu1 %v1257_v46 }
0x10f8   :  { %v1256_v30 = vpop.xlane.xlu0 %1255 }
0x10f9   :  { %v1260_v33 = vmul.f32 0.03125, %v1256_v30 }
0x10fa   :  { %v1259_v34 = vpop.xlane.xlu1 %1258 }
0x10fb   :  { %v1262_v35 = vadd.f32 1e-12, %v1260_v33  ;;  %v1261_v36 = vmul.f32 0.03125, %v1259_v34 }
0x10fd   :  { %1931 = vrsqrt.f32 %v1262_v35  ;;  %v1263_v37 = vadd.f32 1e-12, %v1261_v36 }
0x10ff   :  { %1933 = vrsqrt.f32 %v1263_v37  ;;  %v1881_v37 = vld [vmem:[%s2379_s16] sm:$0xff]  }
0x1107   :  { %v1932_v38 = vpop.eup %1931 }
0x1108   :  { %v1266_v40 = vmul.f32 %v1932_v38, %v1250_v24  ;;  %v1882_v38 = vld [vmem:[%s2379_s16 + $0x8] sm:$0xff]  }
0x1109   :  { %v1934_v41 = vpop.eup %1933 }
0x110a   :  { %v1274_v42 = vmul.f32 %v1635_v39, %v1266_v40  ;;  %v1267_v43 = vmul.f32 %v1934_v41, %v1251_v26 }
0x110c   :  { %v1275_v45 = vmul.f32 %v1635_v39, %v1267_v43  ;;  %v1282_v48 = vadd.f32 %v1636_v44, %v1274_v42 }
0x110e   :  { %v1283_v49 = vadd.f32 %v1636_v44, %v1275_v45 }
0x1110   :  { %v1284_v51 = vpack.c.bf16 %v1283_v49, %v1282_v48 }
0x1112   :  { %1831 = vmatmul.mubr.msk.bf16.vlgmr.msra.gmra.mrb[32].mxu1 %vm64_vm0, %v1284_v51 }
0x1113   :  { %1850 = vmatprep.mubr.msk.bf16.mxu1 %vm1944_vm1, %v1943_v15  ;;  %1847 = vmatpush3.bf16.msra.mxu1 %v1881_v37 }
0x1114   :  { %1848 = vmatprep.subr.bf16.mxu1 %v1943_v15  ;;  %v1664_v15 = vld [vmem:[%s2378_s15 + $0x1] ss:$0 sm:$0xff] }
0x1117   :  { %1849 = vmatpush3.bf16.msra.mxu1 %v1882_v38 }
0x11e5   :  { %v1347_v58 = vpop.f32.mrb[32].mxu1 }
0x11e6   :  { %v1348_v59 = vadd.f32 %v1642_v57, %v1347_v58  ;;  %v1832_v60 = vpop.f32.mrb[33].mxu1 }
0x11e7   :  { %v1350_v61 = vpop.f32.mrb[34].mxu1 }
0x11e8   :  { %v1356_v62 = vmul.f32 0.044715, %v1348_v59  ;;  %v1351_v63 = vadd.f32 %v1642_v57, %v1350_v61  ;;  %v1833_v0 = vpop.f32.mrb[35].mxu1  ;;  %v1354_v13 = vmul.f32 0.5, %v1348_v59 }
0x11ea   :  { %v1358_v1 = vmul.f32 %v1356_v62, %v1348_v59  ;;  %v1357_v2 = vmul.f32 0.044715, %v1351_v63  ;;  %v1355_v14 = vmul.f32 0.5, %v1351_v63 }
0x11ec   :  { %v1360_v3 = vmul.f32 %v1358_v1, %v1348_v59  ;;  %v1359_v4 = vmul.f32 %v1357_v2, %v1351_v63 }
0x11ee   :  { %v1362_v5 = vadd.f32 %v1360_v3, %v1348_v59  ;;  %v1361_v6 = vmul.f32 %v1359_v4, %v1351_v63  ;;  %v1665_v59 = vld [vmem:[%s2380_s17] ss:$0 sm:$0xff] }
0x11f0   :  { %v1364_v7 = vmul.f32 0.7978846, %v1362_v5  ;;  %v1363_v8 = vadd.f32 %v1361_v6, %v1351_v63 }
0x11f2   :  { %1935 = vtanh.f32 %v1364_v7  ;;  %v1365_v9 = vmul.f32 0.7978846, %v1363_v8 }
0x11f4   :  { %1937 = vtanh.f32 %v1365_v9 }
0x11fc   :  { %v1936_v10 = vpop.eup %1935 }
0x11fd   :  { %v1368_v11 = vadd.f32 1.0, %v1936_v10 }
0x11fe   :  { %v1938_v12 = vpop.eup %1937 }
0x11ff   :  { %v1369_v16 = vadd.f32 1.0, %v1938_v12  ;;  %v1370_v17 = vmul.f32 %v1368_v11, %v1354_v13 }
0x1201   :  { %v1371_v18 = vmul.f32 %v1369_v16, %v1355_v14 }
0x1203   :  { %v1372_v19 = vpack.c.bf16 %v1371_v18, %v1370_v17 }
0x1205   :  { %1843 = vmatmul.mubr.msk.bf16.vlgmr.msra.gmra.mrb[32].mxu0 %vm712_vm3, %v1372_v19 }
0x12d8   :  { %v1451_v32 = vpop.f32.mrb[32].mxu0 }
0x12d9   :  { %v1452_v20 = vadd.f32 %v1655_v31, %v1451_v32  ;;  %v1844_v21 = vpop.f32.mrb[33].mxu0 }
0x12da   :  { %v1454_v22 = vpop.f32.mrb[34].mxu0 }
0x12db   :  { %v1455_v23 = vadd.f32 %v1655_v31, %v1454_v22  ;;  %v1845_v50 = vpop.f32.mrb[35].mxu0  ;;  %v1458_v24 = vadd.f32 %v1452_v20, %v1282_v48  ;;  %v1663_v48 = vld [vmem:[%s2377_s14 + $0x1] ss:$0 sm:$0xff] }
0x12dd   :  { %v1464_v25 = vsel %vm64_vm0, %v1458_v24, 0.0  ;;  %v1459_v26 = vadd.f32 %v1455_v23, %v1283_v49 }
0x12de   :  { %1465 = vadd.xlane.f32.xlu0 %v1464_v25 }
0x12df   :  { %v1467_v52 = vsel %vm64_vm0, %v1459_v26, 0.0 }
0x12e0   :  { %1468 = vadd.xlane.f32.xlu1 %v1467_v52 }
0x136b   :  { %v1466_v27 = vpop.xlane.xlu0 %1465 }
0x136c   :  { %v1470_v28 = vmul.f32 0.03125, %v1466_v27 }
0x136d   :  { %v1469_v46 = vpop.xlane.xlu1 %1468 }
0x136e   :  { %v1472_v47 = vsub.f32 %v1458_v24, %v1470_v28  ;;  %v1471_v29 = vmul.f32 0.03125, %v1469_v46 }
0x1370   :  { %v1473_v30 = vsub.f32 %v1459_v26, %v1471_v29  ;;  %v1474_v33 = vmul.f32 %v1472_v47, %v1472_v47 }
0x1372   :  { %v1476_v34 = vsel %vm64_vm0, %v1474_v33, 0.0  ;;  %v1475_v35 = vmul.f32 %v1473_v30, %v1473_v30 }
0x1373   :  { %1477 = vadd.xlane.f32.xlu0 %v1476_v34 }
0x1374   :  { %v1479_v36 = vsel %vm64_vm0, %v1475_v35, 0.0 }
0x1375   :  { %1480 = vadd.xlane.f32.xlu1 %v1479_v36 }
0x1400   :  { %v1478_v39 = vpop.xlane.xlu0 %1477 }
0x1401   :  { %v1482_v40 = vmul.f32 0.03125, %v1478_v39 }
0x1402   :  { %v1481_v41 = vpop.xlane.xlu1 %1480 }
0x1403   :  { %v1484_v42 = vadd.f32 1e-12, %v1482_v40  ;;  %v1483_v43 = vmul.f32 0.03125, %v1481_v41 }
0x1405   :  { %1939 = vrsqrt.f32 %v1484_v42  ;;  %v1485_v44 = vadd.f32 1e-12, %v1483_v43 }
0x1407   :  { %1941 = vrsqrt.f32 %v1485_v44 }
0x140f   :  { %v1940_v45 = vpop.eup %1939 }
0x1410   :  { %v1488_v49 = vmul.f32 %v1940_v45, %v1472_v47 }
0x1411   :  { %v1942_v51 = vpop.eup %1941 }
0x1412   :  { %v1496_v53 = vmul.f32 %v1663_v48, %v1488_v49  ;;  %v1489_v54 = vmul.f32 %v1942_v51, %v1473_v30 }
0x1414   :  { %v1497_v55 = vmul.f32 %v1663_v48, %v1489_v54  ;;  %v1504_v56 = vadd.f32 %v1664_v15, %v1496_v53 }
0x1416   :  { %v1505_v57 = vadd.f32 %v1664_v15, %v1497_v55 }
0x1418   :  { %v1506_v58 = vpack.c.bf16 %v1505_v57, %v1504_v56 }
0x141a   :  { %1851 = vmatmul.mubr.msk.bf16.vlgmr.msra.gmra.mrb[36].mxu1 %vm64_vm0, %v1506_v58 }
0x14ed   :  { %v1567_v60 = vpop.f32.mrb[36].mxu1 }
0x14ee   :  { %v1568_v61 = vadd.f32 %v1665_v59, %v1567_v60  ;;  %v1852_v62 = vpop.f32.mrb[37].mxu1 }
0x14ef   :  { %v1570_v63 = vpop.f32.mrb[38].mxu1 }
0x14f0   :  { %1575 = vst.msk [vmem:[%s2381_s18] sm:$0xff] %vm1574_vm4, %v1568_v61  ;;  %v1571_v0 = vadd.f32 %v1665_v59, %v1570_v63  ;;  %v1853_v1 = vpop.f32.mrb[39].mxu1 }
0x14f2   :  { %1576 = vst.msk [vmem:[%s2381_s18 + $0x8] sm:$0xff] %vm1574_vm4, %v1571_v0 }

</bundles_post_ra>
